<compile_context>
chip_gen: v7x
topology: tpu7x:2x2x1
jax: 0.10.0
libtpu: 0.0.40
codegen_flags: <defaults>
</compile_context>

<pallas_src>
import numpy as np
import jax
import jax.numpy as jnp
from jax.experimental import pallas as pl
from jax.experimental.pallas import tpu as pltpu

BANDS = [2, 3, 3, 3, 3, 3, 3, 3, 3, 3, 3,
         8, 8, 8, 8, 8, 8, 8, 8, 8, 8, 8, 8,
         16, 16, 16, 16, 16, 16, 16, 17]
N_BANDS = len(BANDS)                    # 31
F_TOTAL = sum(BANDS)                    # 257
DIMS = [2 * b for b in BANDS]           # per-band feature counts d_i
F2 = sum(DIMS)                          # 514 = concatenated feature dim
OFFSETS = np.cumsum([0] + DIMS)[:-1]    # column offset of each band in (.., 514)
NSEG = 128                              # band axis padded to one lane group
EPS = 1e-5                              # nn.GroupNorm default


def _round_up(v, m):
    return (v + m - 1) // m * m


def _build_segment_maps():
    seg = np.zeros((F2, NSEG), np.float32)          # feature -> band one-hot
    for i, d in enumerate(DIMS):
        seg[OFFSETS[i]:OFFSETS[i] + d, i] = 1.0
    return jnp.asarray(seg), jnp.asarray(np.ascontiguousarray(seg.T))


SEG_MAP, SEG_MAP_T = _build_segment_maps()


def band_split_kernel(x_ref, seg_ref, segt_ref, invc_ref, w_ref, b_ref, o_ref):
    # Per grid step = one batch sample.
    #   x_ref:     (T, F2)        concatenated band features, f32
    #   seg_ref:   (F2, NSEG)     one-hot feature -> band map
    #   segt_ref:  (NSEG, F2)     transpose (band -> feature broadcast)
    #   invc_ref:  (1, NSEG)      1/(d_i*T), 0 for padded band slots
    #   w_ref:     (F2, NOUT_PAD) fused block-diag projection (gamma folded), bf16
    #   b_ref:     (1, NOUT_PAD)  fused bias (beta folded; zeros in pad columns)
    #   o_ref:     (T, NOUT_PAD)
    x = x_ref[...]

    # Single-pass GroupNorm(1, d_i) statistics for all 31 bands at once.
    col_sum = jnp.sum(x, axis=0, keepdims=True)          # (1, F2)
    col_sq = jnp.sum(x * x, axis=0, keepdims=True)       # (1, F2)
    sum_b = jnp.dot(col_sum, seg_ref[...], preferred_element_type=jnp.float32)
    sq_b = jnp.dot(col_sq, seg_ref[...], preferred_element_type=jnp.float32)
    inv_n = invc_ref[...]                                 # (1, NSEG)
    mean_b = sum_b * inv_n
    var_b = sq_b * inv_n - mean_b * mean_b
    inv_std_b = jax.lax.rsqrt(var_b + EPS)

    # Broadcast per-band stats back to per-feature columns (padded band rows of
    # segt are zero, so their rsqrt(eps) values contribute nothing).
    mean_f = jnp.dot(mean_b, segt_ref[...], preferred_element_type=jnp.float32)
    scale_f = jnp.dot(inv_std_b, segt_ref[...], preferred_element_type=jnp.float32)

    xhat = (x - mean_f) * scale_f                         # (T, F2)

    # All 31 Linear(d_i -> C), with the GroupNorm affine pre-folded, as one
    # block-diagonal bf16 matmul (f32 accumulation on the MXU).
    out = jnp.dot(xhat.astype(jnp.bfloat16), w_ref[...],
                  preferred_element_type=jnp.float32)     # (T, NOUT_PAD)
    o_ref[...] = out + b_ref[...]


def make_params(key, channels):
    """Deterministic per-band parameters + their fused (block-diagonal) form."""
    C = channels
    n_out = N_BANDS * C
    n_out_pad = _round_up(n_out, 256)      # full 256-wide MXU tiles on v6e/v7x

    gammas, betas, ws, bs = [], [], [], []
    # Columns ordered c*N_BANDS + band so the output reshapes directly to
    # (B, T, C, N_BANDS) without a transpose.
    w_fused = np.zeros((F2, C, N_BANDS), np.float32)
    b_fused = np.zeros((C, N_BANDS), np.float32)

    for i, band in enumerate(BANDS):
        d = 2 * band
        k1, k2, k3, k4 = jax.random.split(jax.random.fold_in(key, i), 4)
        gamma = 1.0 + 0.1 * jax.random.normal(k1, (d,), jnp.float32)
        beta = 0.1 * jax.random.normal(k2, (d,), jnp.float32)
        w = 0.1 * jax.random.normal(k3, (d, C), jnp.float32)   # (in, out)
        b = 0.1 * jax.random.normal(k4, (C,), jnp.float32)
        gammas.append(gamma); betas.append(beta); ws.append(w); bs.append(b)

        # Fold GroupNorm affine into the projection:
        #   y = xhat*gamma + beta ; out = y @ W + b
        #     = xhat @ (diag(gamma) @ W) + (beta @ W + b)
        g_np = np.asarray(gamma); be_np = np.asarray(beta)
        w_np = np.asarray(w); b_np = np.asarray(b)
        off = int(OFFSETS[i])
        w_fused[off:off + d, :, i] = g_np[:, None] * w_np
        b_fused[:, i] = be_np @ w_np + b_np

    wf = np.zeros((F2, n_out_pad), np.float32)
    wf[:, :n_out] = w_fused.reshape(F2, n_out)
    bf = np.zeros((1, n_out_pad), np.float32)
    bf[0, :n_out] = b_fused.reshape(n_out)

    fused = (jnp.asarray(wf, dtype=jnp.bfloat16), jnp.asarray(bf))
    return {"fused": fused, "per_band": (gammas, betas, ws, bs)}


def band_split(x, params, channels):
    """x: (B, F=257, T, 2) float32  ->  z: (B, T, C, N_BANDS)."""
    w_fused, b_fused = params["fused"]
    B, F, T, two = x.shape
    assert F == F_TOTAL and two == 2
    C = channels
    n_out = N_BANDS * C
    n_out_pad = w_fused.shape[1]

    # Only glue: (B, F, T, 2) -> (B, T, F, 2) -> (B, T, 514).  Band i occupies
    # columns [OFFSETS[i], OFFSETS[i] + 2*band_i), exactly the per-band
    # flattened (freq, re/im) features of the PyTorch module.
    x2 = jnp.transpose(x, (0, 2, 1, 3)).reshape(B, T, F2)

    inv_count = np.zeros((1, NSEG), np.float32)
    for i, d in enumerate(DIMS):
        inv_count[0, i] = 1.0 / (d * T)
    inv_count = jnp.asarray(inv_count)

    out = pl.pallas_call(
        band_split_kernel,
        out_shape=jax.ShapeDtypeStruct((B, T, n_out_pad), jnp.float32),
        grid_spec=pltpu.PrefetchScalarGridSpec(
            num_scalar_prefetch=0,
            grid=(B,),
            in_specs=[
                pl.BlockSpec((None, T, F2), lambda b: (b, 0, 0)),
                # Parameters: whole-array blocks with constant index maps ->
                # DMA'd into VMEM once and reused for every grid step.
                pl.BlockSpec((F2, NSEG), lambda b: (0, 0)),
                pl.BlockSpec((NSEG, F2), lambda b: (0, 0)),
                pl.BlockSpec((1, NSEG), lambda b: (0, 0)),
                pl.BlockSpec((F2, n_out_pad), lambda b: (0, 0)),
                pl.BlockSpec((1, n_out_pad), lambda b: (0, 0)),
            ],
            out_specs=pl.BlockSpec((None, T, n_out_pad), lambda b: (b, 0, 0)),
        ),
        compiler_params=pltpu.CompilerParams(
            dimension_semantics=("parallel",)),   # v7x: split batch over 2 TCs
    )(x2, SEG_MAP, SEG_MAP_T, inv_count, w_fused, b_fused)

    # Lane-dense slab -> (B, T, C, 31); no transpose (columns are c*31 + band).
    return out[:, :, :n_out].reshape(B, T, C, N_BANDS)


def band_split_reference(x, params, channels):
    """Pure-JAX reference reproducing the PyTorch forward (per band, f32)."""
    gammas, betas, ws, bs = params["per_band"]
    B, F, T, _ = x.shape
    xt = jnp.transpose(x, (0, 2, 1, 3))
    outs = []
    hz = 0
    for i, band in enumerate(BANDS):
        d = 2 * band
        seg = xt[:, :, hz:hz + band, :].reshape(B, T, d)
        mean = jnp.mean(seg, axis=(1, 2), keepdims=True)
        var = jnp.mean((seg - mean) ** 2, axis=(1, 2), keepdims=True)
        xhat = (seg - mean) / jnp.sqrt(var + EPS)
        y = xhat * gammas[i][None, None, :] + betas[i][None, None, :]
        outs.append(y @ ws[i] + bs[i])
        hz += band
    return jnp.stack(outs, axis=-1)


if __name__ == "__main__":
    B, T, C = 2, 8, 32
    key = jax.random.PRNGKey(0)
    kx, kp = jax.random.split(key)
    x = jax.random.normal(kx, (B, F_TOTAL, T, 2), jnp.float32)
    params = make_params(kp, C)

    z = jax.block_until_ready(band_split(x, params, C))
    z_ref = band_split_reference(x, params, C)

    assert z.shape == (B, T, C, N_BANDS), z.shape
    # bf16 MXU operands in the fused projection (and one-pass variance) give
    # ~1e-2-level deviation from the all-f32 two-pass reference.
    assert jnp.allclose(z, z_ref, atol=3e-2, rtol=3e-2), \
        float(jnp.max(jnp.abs(z - z_ref)))
    print("KERNEL_OK")
</pallas_src>

<mosaic_0001>
module attributes {stable_mosaic.version = 11 : i64} {
  func.func @band_split_kernel(%arg0: i32, %arg1: memref<1x8x514xf32, #tpu.memory_space<vmem>>, %arg2: memref<514x128xf32, #tpu.memory_space<vmem>>, %arg3: memref<128x514xf32, #tpu.memory_space<vmem>>, %arg4: memref<1x128xf32, #tpu.memory_space<vmem>>, %arg5: memref<514x1024xbf16, #tpu.memory_space<vmem>>, %arg6: memref<1x1024xf32, #tpu.memory_space<vmem>>, %arg7: memref<1x8x1024xf32, #tpu.memory_space<vmem>>) attributes {dimension_semantics = [#tpu.dimension_semantics<parallel>], iteration_bounds = array<i64: 2>, scalar_prefetch = 0 : i64, scratch_operands = 0 : i64, tpu.core_type = #tpu.core_type<tc>, window_params = [{transform_indices = @transform_0, window_bounds = array<i64: 1, 8, 514>}, {pipeline_mode = #tpu.pipeline_mode<synchronous>, transform_indices = @transform_1, window_bounds = array<i64: 514, 128>}, {pipeline_mode = #tpu.pipeline_mode<synchronous>, transform_indices = @transform_2, window_bounds = array<i64: 128, 514>}, {pipeline_mode = #tpu.pipeline_mode<synchronous>, transform_indices = @transform_3, window_bounds = array<i64: 1, 128>}, {pipeline_mode = #tpu.pipeline_mode<synchronous>, transform_indices = @transform_4, window_bounds = array<i64: 514, 1024>}, {pipeline_mode = #tpu.pipeline_mode<synchronous>, transform_indices = @transform_5, window_bounds = array<i64: 1, 1024>}, {transform_indices = @transform_6, window_bounds = array<i64: 1, 8, 1024>}]} {
    %c0 = arith.constant 0 : index
    %c0_0 = arith.constant 0 : index
    %c0_1 = arith.constant 0 : index
    %0 = vector.load %arg1[%c0, %c0_0, %c0_1] : memref<1x8x514xf32, #tpu.memory_space<vmem>>, vector<1x8x514xf32>
    %1 = vector.shape_cast %0 : vector<1x8x514xf32> to vector<8x514xf32>
    %cst = arith.constant dense<0.000000e+00> : vector<514xf32>
    %2 = vector.multi_reduction <add>, %1, %cst [0] : vector<8x514xf32> to vector<514xf32>
    %3 = vector.shape_cast %2 : vector<514xf32> to vector<1x514xf32>
    %4 = arith.mulf %1, %1 : vector<8x514xf32>
    %cst_2 = arith.constant dense<0.000000e+00> : vector<514xf32>
    %5 = vector.multi_reduction <add>, %4, %cst_2 [0] : vector<8x514xf32> to vector<514xf32>
    %6 = vector.shape_cast %5 : vector<514xf32> to vector<1x514xf32>
    %c0_3 = arith.constant 0 : index
    %c0_4 = arith.constant 0 : index
    %7 = vector.load %arg2[%c0_3, %c0_4] : memref<514x128xf32, #tpu.memory_space<vmem>>, vector<514x128xf32>
    %cst_5 = arith.constant dense<0.000000e+00> : vector<1x128xf32>
    %8 = tpu.matmul %3, %7, %cst_5 {dimension_numbers = #tpu.dot_dimension_numbers<[1], [0], [0], [1], [0, 0, 1, 1], [], []>} : vector<1x514xf32>, vector<514x128xf32>, vector<1x128xf32> -> vector<1x128xf32>
    %c0_6 = arith.constant 0 : index
    %c0_7 = arith.constant 0 : index
    %9 = vector.load %arg2[%c0_6, %c0_7] : memref<514x128xf32, #tpu.memory_space<vmem>>, vector<514x128xf32>
    %cst_8 = arith.constant dense<0.000000e+00> : vector<1x128xf32>
    %10 = tpu.matmul %6, %9, %cst_8 {dimension_numbers = #tpu.dot_dimension_numbers<[1], [0], [0], [1], [0, 0, 1, 1], [], []>} : vector<1x514xf32>, vector<514x128xf32>, vector<1x128xf32> -> vector<1x128xf32>
    %c0_9 = arith.constant 0 : index
    %c0_10 = arith.constant 0 : index
    %11 = vector.load %arg4[%c0_9, %c0_10] : memref<1x128xf32, #tpu.memory_space<vmem>>, vector<1x128xf32>
    %12 = arith.mulf %8, %11 : vector<1x128xf32>
    %13 = arith.mulf %10, %11 : vector<1x128xf32>
    %14 = arith.mulf %12, %12 : vector<1x128xf32>
    %15 = arith.subf %13, %14 : vector<1x128xf32>
    %cst_11 = arith.constant 9.99999974E-6 : f32
    %16 = vector.broadcast %cst_11 : f32 to vector<1x128xf32>
    %17 = arith.addf %15, %16 : vector<1x128xf32>
    %18 = math.rsqrt %17 : vector<1x128xf32>
    %c0_12 = arith.constant 0 : index
    %c0_13 = arith.constant 0 : index
    %19 = vector.load %arg3[%c0_12, %c0_13] : memref<128x514xf32, #tpu.memory_space<vmem>>, vector<128x514xf32>
    %cst_14 = arith.constant dense<0.000000e+00> : vector<1x514xf32>
    %20 = tpu.matmul %12, %19, %cst_14 {dimension_numbers = #tpu.dot_dimension_numbers<[1], [0], [0], [1], [0, 0, 1, 1], [], []>} : vector<1x128xf32>, vector<128x514xf32>, vector<1x514xf32> -> vector<1x514xf32>
    %c0_15 = arith.constant 0 : index
    %c0_16 = arith.constant 0 : index
    %21 = vector.load %arg3[%c0_15, %c0_16] : memref<128x514xf32, #tpu.memory_space<vmem>>, vector<128x514xf32>
    %cst_17 = arith.constant dense<0.000000e+00> : vector<1x514xf32>
    %22 = tpu.matmul %18, %21, %cst_17 {dimension_numbers = #tpu.dot_dimension_numbers<[1], [0], [0], [1], [0, 0, 1, 1], [], []>} : vector<1x128xf32>, vector<128x514xf32>, vector<1x514xf32> -> vector<1x514xf32>
    %23 = vector.broadcast %20 : vector<1x514xf32> to vector<8x514xf32>
    %24 = arith.subf %1, %23 : vector<8x514xf32>
    %25 = vector.broadcast %22 : vector<1x514xf32> to vector<8x514xf32>
    %26 = arith.mulf %24, %25 : vector<8x514xf32>
    %27 = arith.truncf %26 : vector<8x514xf32> to vector<8x514xbf16>
    %c0_18 = arith.constant 0 : index
    %c0_19 = arith.constant 0 : index
    %28 = vector.load %arg5[%c0_18, %c0_19] : memref<514x1024xbf16, #tpu.memory_space<vmem>>, vector<514x1024xbf16>
    %cst_20 = arith.constant dense<0.000000e+00> : vector<8x1024xf32>
    %29 = tpu.matmul %27, %28, %cst_20 {dimension_numbers = #tpu.dot_dimension_numbers<[1], [0], [0], [1], [0, 0, 1, 1], [], []>} : vector<8x514xbf16>, vector<514x1024xbf16>, vector<8x1024xf32> -> vector<8x1024xf32>
    %c0_21 = arith.constant 0 : index
    %c0_22 = arith.constant 0 : index
    %30 = vector.load %arg6[%c0_21, %c0_22] : memref<1x1024xf32, #tpu.memory_space<vmem>>, vector<1x1024xf32>
    %31 = vector.broadcast %30 : vector<1x1024xf32> to vector<8x1024xf32>
    %32 = arith.addf %29, %31 : vector<8x1024xf32>
    %c0_23 = arith.constant 0 : index
    %c0_24 = arith.constant 0 : index
    %c0_25 = arith.constant 0 : index
    %33 = vector.load %arg7[%c0_23, %c0_24, %c0_25] : memref<1x8x1024xf32, #tpu.memory_space<vmem>>, vector<1x8x1024xf32>
    %34 = vector.shape_cast %33 : vector<1x8x1024xf32> to vector<8x1024xf32>
    %35 = vector.shape_cast %32 : vector<8x1024xf32> to vector<1x8x1024xf32>
    tpu.vector_store %arg7[%c0_23, %c0_24, %c0_25], %35 {strides = array<i32>} : memref<1x8x1024xf32, #tpu.memory_space<vmem>>, vector<1x8x1024xf32>,
    return
  }
  func.func @transform_0(%arg0: i32) -> (i32, i32, i32) {
    %c0_i32 = arith.constant 0 : i32
    %c0_i32_0 = arith.constant 0 : i32
    %c0_i32_1 = arith.constant 0 : i32
    return %arg0, %c0_i32, %c0_i32_0 : i32, i32, i32
  }
  func.func @transform_1(%arg0: i32) -> (i32, i32) {
    %c0_i32 = arith.constant 0 : i32
    %c0_i32_0 = arith.constant 0 : i32
    %c0_i32_1 = arith.constant 0 : i32
    return %c0_i32, %c0_i32_0 : i32, i32
  }
  func.func @transform_2(%arg0: i32) -> (i32, i32) {
    %c0_i32 = arith.constant 0 : i32
    %c0_i32_0 = arith.constant 0 : i32
    %c0_i32_1 = arith.constant 0 : i32
    return %c0_i32, %c0_i32_0 : i32, i32
  }
  func.func @transform_3(%arg0: i32) -> (i32, i32) {
    %c0_i32 = arith.constant 0 : i32
    %c0_i32_0 = arith.constant 0 : i32
    %c0_i32_1 = arith.constant 0 : i32
    return %c0_i32, %c0_i32_0 : i32, i32
  }
  func.func @transform_4(%arg0: i32) -> (i32, i32) {
    %c0_i32 = arith.constant 0 : i32
    %c0_i32_0 = arith.constant 0 : i32
    %c0_i32_1 = arith.constant 0 : i32
    return %c0_i32, %c0_i32_0 : i32, i32
  }
  func.func @transform_5(%arg0: i32) -> (i32, i32) {
    %c0_i32 = arith.constant 0 : i32
    %c0_i32_0 = arith.constant 0 : i32
    %c0_i32_1 = arith.constant 0 : i32
    return %c0_i32, %c0_i32_0 : i32, i32
  }
  func.func @transform_6(%arg0: i32) -> (i32, i32, i32) {
    %c0_i32 = arith.constant 0 : i32
    %c0_i32_0 = arith.constant 0 : i32
    %c0_i32_1 = arith.constant 0 : i32
    return %arg0, %c0_i32, %c0_i32_0 : i32, i32, i32
  }
}

</mosaic_0001>

<bundles_post_ra>
// kernel: tpu_custom_call.1
= control target key start
LH: loop header
LB: loop body
LE: loop exit
PB: predicated region body
PF: predicated region fallthrough
CT: control target
= control target key end

     0   :  { %11 = vsyncpa [#allocation3], 0  ;;  %s5961_s0 = inlined_call_operand.hbm [shape: f32[2,8,514], index: 0, kind: input, shape index: {}]   ;;  %s5962_s1 = inlined_call_operand.hbm [shape: f32[514,128], index: 1, kind: input, shape index: {}]   ;;  %s5963_s2 = inlined_call_operand.vmem [shape: f32[128,514], index: 2, kind: input, shape index: {}]   ;;  %s5964_s3 = inlined_call_operand.hbm [shape: f32[1,128], index: 3, kind: input, shape index: {}]   ;;  %s5965_s4 = inlined_call_operand.hbm [shape: bf16[514,1024], index: 4, kind: input, shape index: {}]   ;;  %s5966_s5 = inlined_call_operand.hbm [shape: f32[1,1024], index: 5, kind: input, shape index: {}]   ;;  %s5967_s6 = inlined_call_operand.hbm [shape: f32[2,8,1024], index: 6, kind: output, shape index: {}]  }
   0x1   :  { %13 = vsyncpa [#allocation3 + $0x1], 0 }
   0x2   :  { %14 = vsyncpa [#allocation6], 0 }
   0x3   :  { %15 = vsyncpa [#allocation9], 0 }
   0x4   :  { %16 = vsyncpa [#allocation4], 0 }
   0x5   :  { %18 = vsyncpa [#allocation4 + $0x1], 0  ;;  %s4988_s21 = smov 0   ;;  %s4990_s22 = smov 0  }
   0x6   :  { %s4992_s23 = smov 0   ;;  %s4994_s24 = smov 0  }
   0x7 LB: > { %s4939_s25 = smov [#allocation5]   ;;  %s5009_s27 = sadd.s32 4294967295, %s4937_s24   ;;  %s4937_s24 = sphi %s4994_s24, %s5990_s24   ;;  %s4933_s23 = sphi %s4992_s23, %s5989_s23   ;;  %s4929_s22 = sphi %s4990_s22, %s5988_s22   ;;  %s4925_s21 = sphi %s4988_s21, %s5987_s21  }
   0x8   : > { %s198_s26 = sshll.u32 %s4939_s25, 4  ;;  %p3711_p0 = scmp.ge.s32.totalorder %s4937_s24, 1  ;;  %s5014_s26 = int_to_ptr.vmem [resolvable:$true] %s198_s26 }
   0x9   : > { %p5968_p1 = scmp.eq.s32.totalorder %s5009_s27, 0  ;;  %p186_p2 = scmp.lt.s32.totalorder %s4937_s24, 3 }
   0xa   : > { %s4940_s29 = smov [#allocation8]   ;;  %s4941_s8 = smov [#allocation7]  }
   0xb   : > { %p5016_p3 = pnand %p3711_p0, %p186_p2  ;;  %s225_s30 = sshll.u32 %s4940_s29, 4  ;;  %s5029_s30 = int_to_ptr.vmem [resolvable:$true] %s225_s30 }
   0xc   : > { %s5031_s9 = sshll.u32 %s4941_s8, 4  ;;  %s4721_s12 = scalar_lea.hbm %s5962_s1, 8320  ;;  %s216_s9 = int_to_ptr.vmem [resolvable:$true] %s5031_s9 }
   0xd   : > { %s5971_s28 = scalar_select %p5016_p3, 1, 0 }
   0xe   : > { %p4631_p5 = pneg %p5016_p3  ;;  %p4722_p7 = scmp.ne.s32.totalorder %s5962_s1, %s4721_s12 }
   0xf   : > { %p4728_p11 = scmp.lt.u32.totalorder %s4721_s12, %s5962_s1 }
  0x10   : > { %p5025_p6 = pnand %p4631_p5, %p5968_p1 }
  0x12   : > { %p5041_p8 = pneg %p5025_p6 }
  0x14   : > { %p4724_p9 = pnand %p5041_p8, %p4722_p7 }
  0x16   : > { %p4725_p10 = pneg %p4724_p9 }
  0x18   : > { %p4730_p12 = pnand %p4728_p11, %p4725_p10 }
  0x1a   : > { %4733 = shalt.err (!%p4730_p12)
}
  0x1b   : > { %s4734_s18 = scalar_lea.vmem %s5014_s26, 8320  ;;  %p4742_p5 = scmp.lt.s32.totalorder %s5014_s26, %s5014_s26 }
  0x1c   : > { %p4735_p13 = scmp.ne.s32.totalorder %s5014_s26, %s4734_s18  ;;  %p4743_p4 = scmp.lt.s32.totalorder %s4734_s18, %s4734_s18 }
  0x1e   : > { %p4737_p0 = pnand %p4735_p13, %p5041_p8  ;;  %p4744_p7 = por %p4743_p4, %p4742_p5 }
  0x20   : > { %p4738_p2 = pneg %p4737_p0 }
  0x22   : > { %p4745_p9 = pnand %p4744_p7, %p4738_p2 }
  0x24   : > { %4748 = shalt.err (!%p4745_p9)
}
  0x25   : > { %s4942_s19 = smov 128   ;;  %s4943_s20 = smov 8  }
  0x26   : > { %4634 = dma.hbm_to_vmem [thread:$0]  (!%p5025_p6), %s5962_s1, 8320, %s5014_s26, [#allocation6], %s4942_s19, %s4942_s19, %s4943_s20  }
  0x27   : > { %s4749_s11 = scalar_lea.hbm %s5965_s4, 33280 }
  0x28   : > { %p4750_p4 = scmp.ne.s32.totalorder %s5965_s4, %s4749_s11  ;;  %p4756_p12 = scmp.lt.u32.totalorder %s4749_s11, %s5965_s4 }
  0x2a   : > { %p4752_p10 = pnand %p4750_p4, %p5041_p8 }
  0x2c   : > { %p4753_p11 = pneg %p4752_p10 }
  0x2e   : > { %p4758_p13 = pnand %p4756_p12, %p4753_p11 }
  0x30   : > { %4761 = shalt.err (!%p4758_p13)
}
  0x31   : > { %s4762_s26 = scalar_lea.vmem %s5029_s30, 33280  ;;  %p4770_p7 = scmp.lt.s32.totalorder %s5029_s30, %s5029_s30 }
  0x32   : > { %p4763_p0 = scmp.ne.s32.totalorder %s5029_s30, %s4762_s26  ;;  %p4771_p9 = scmp.lt.s32.totalorder %s4762_s26, %s4762_s26 }
  0x34   : > { %p4765_p2 = pnand %p4763_p0, %p5041_p8  ;;  %p4772_p4 = por %p4771_p9, %p4770_p7 }
  0x36   : > { %p4766_p5 = pneg %p4765_p2 }
  0x38   : > { %p4773_p10 = pnand %p4772_p4, %p4766_p5 }
  0x3a   : > { %4776 = shalt.err (!%p4773_p10)
}
  0x3b   : > { %s4944_s17 = smov 512   ;;  %s4945_s18 = smov 32  }
  0x3c   : > { %4640 = dma.hbm_to_vmem [thread:$0]  (!%p5025_p6), %s5965_s4, 33280, %s5029_s30, [#allocation9], %s4944_s17, %s4944_s17, %s4945_s18  }
  0x3d   : > { %s4777_s8 = scalar_lea.hbm %s5964_s3, 16 }
  0x3e   : > { %p4778_p11 = scmp.ne.s32.totalorder %s5964_s3, %s4777_s8  ;;  %p4784_p0 = scmp.lt.u32.totalorder %s4777_s8, %s5964_s3 }
  0x40   : > { %p4780_p12 = pnand %p4778_p11, %p5041_p8 }
  0x42   : > { %p4781_p13 = pneg %p4780_p12 }
  0x44   : > { %p4786_p2 = pnand %p4784_p0, %p4781_p13 }
  0x46   : > { %4789 = shalt.err (!%p4786_p2)
}
  0x47   : > { %s4790_s14 = scalar_lea.vmem %s216_s9, 16  ;;  %s4797_s30 = scalar_lea.vmem %s216_s9, 32 }
  0x48   : > { %p4791_p5 = scmp.ne.s32.totalorder %s216_s9, %s4790_s14  ;;  %p4798_p4 = scmp.lt.s32.totalorder %s216_s9, %s216_s9 }
  0x49   : > { %p4799_p10 = scmp.lt.s32.totalorder %s4797_s30, %s4790_s14 }
  0x4a   : > { %p4793_p7 = pnand %p4791_p5, %p5041_p8 }
  0x4b   : > { %p4800_p1 = por %p4799_p10, %p4798_p4 }
  0x4c   : > { %p4794_p9 = pneg %p4793_p7 }
  0x4e   : > { %p4801_p3 = pnand %p4800_p1, %p4794_p9 }
  0x50   : > { %4804 = shalt.err (!%p4801_p3)
}
  0x51   : > { %4637 = dma.hbm_to_vmem [thread:$0]  (!%p5025_p6), %s5964_s3, 16, %s216_s9, [#allocation6]  }
  0x52   : > { %s4946_s17 = smov [#allocation10]   ;;  %s4805_s25 = scalar_lea.hbm %s5966_s5, 128 }
  0x53   : > { %s239_s18 = sshll.u32 %s4946_s17, 4  ;;  %p4806_p11 = scmp.ne.s32.totalorder %s5966_s5, %s4805_s25  ;;  %s240_s18 = int_to_ptr.vmem [resolvable:$true] %s239_s18 }
  0x54   : > { %p4812_p12 = scmp.lt.u32.totalorder %s4805_s25, %s5966_s5 }
  0x55   : > { %p4808_p1 = pnand %p4806_p11, %p5041_p8 }
  0x57   : > { %p4809_p3 = pneg %p4808_p1 }
  0x59   : > { %p4814_p13 = pnand %p4812_p12, %p4809_p3 }
  0x5b   : > { %4817 = shalt.err (!%p4814_p13)
}
  0x5c   : > { %s4818_s9 = scalar_lea.vmem %s240_s18, 128  ;;  %p4826_p7 = scmp.lt.s32.totalorder %s240_s18, %s240_s18 }
  0x5d   : > { %p4819_p0 = scmp.ne.s32.totalorder %s240_s18, %s4818_s9  ;;  %p4827_p9 = scmp.lt.s32.totalorder %s4818_s9, %s4818_s9 }
  0x5f   : > { %p4821_p2 = pnand %p4819_p0, %p5041_p8  ;;  %p4828_p4 = por %p4827_p9, %p4826_p7 }
  0x61   : > { %p4822_p5 = pneg %p4821_p2 }
  0x63   : > { %p4829_p10 = pnand %p4828_p4, %p4822_p5 }
  0x65   : > { %4832 = shalt.err (!%p4829_p10)
}
  0x66   : > { %4643 = dma.hbm_to_vmem [thread:$0]  (!%p5025_p6), %s5966_s5, 128, %s240_s18, [#allocation9]  }
  0x67   : > { %s3710_s15 = sadd.s32 4294967294, %s4937_s24   ;;  %s5124_s7 = sadd.s32 1, %s4937_s24  }
  0x68   : > { %s28_s14 = ssub.s32 %s4937_s24, %s5124_s7  ;;  %s31_s30 = sadd.s32 1, %s4933_s23 }
  0x69   : > { %p29_p8 = scmp.eq.s32.totalorder %s28_s14, 0  ;;  %p38_p11 = scmp.ne.s32.totalorder %s4933_s23, %s4929_s22 }
  0x6a   : > { %p39_p1 = scmp.eq.s32.totalorder %s4937_s24, 0  ;;  %p44_p3 = scmp.ne.s32.totalorder %s4929_s22, %s4925_s21 }
  0x6b   : > { %s5135_s16 = scalar_select %p29_p8, %s4933_s23, %s31_s30  }
  0x6c   : > { %p40_p12 = por %p39_p1, %p38_p11  ;;  %p5974_p13 = scmp.eq.s32.totalorder %s5009_s27, 0 }
  0x6d   : > { %p173_p6 = scmp.eq.s32.totalorder %s5009_s27, 1  ;;  %p179_p2 = scmp.eq.s32.totalorder %s3710_s15, 1 }
  0x6e   : > { %p5139_p0 = por %p5974_p13, %p44_p3  ;;  %p4656_p5 = scmp.lt.s32.totalorder %s4937_s24, 2 }
  0x6f   : > { %s250_s17 = sand.u32 1, %s4933_s23   ;;  %p5146_p7 = por %p173_p6, %p38_p11 }
  0x70   : > { %p5150_p9 = por %p179_p2, %p44_p3  ;;  %s4608_s20 = smul.u32 40, %s250_s17 }
  0x71   : > { %s5976_s18 = scalar_select %p5146_p7, 1, 0 }
  0x72   : > { %s5977_s19 = scalar_select %p5150_p9, 1, 0 }
  0x73   : > { %s4609_s25 = smul.u32 640, %s4937_s24  ;;  %p5155_p4 = pnand %p4656_p5, %p40_p12 }
  0x74   : > { %s254_s9 = scalar_lea.vmem [#allocation2], %s4608_s20  ;;  %s251_s13 = scalar_lea.sflag [#allocation3], %s250_s17 }
  0x75   : > { %s5162_s11 = scalar_lea.hbm %s5961_s0, %s4609_s25  ;;  %s262_s12 = sshll.u32 %s254_s9, 4  ;;  %s5164_s12 = int_to_ptr.vmem [resolvable:$true] %s262_s12 }
  0x76   : > { %s4833_s15 = scalar_lea.hbm %s5162_s11, 640  ;;  %p4835_p8 = pneg %p5155_p4 }
  0x77   : > { %p4834_p10 = scmp.ne.s32.totalorder %s5162_s11, %s4833_s15  ;;  %s4838_s25 = scalar_lea.hbm %s5961_s0, 1280 }
  0x78   : > { %p4839_p3 = scmp.lt.u32.totalorder %s5162_s11, %s5961_s0  ;;  %p4840_p12 = scmp.lt.u32.totalorder %s4838_s25, %s4833_s15 }
  0x79   : > { %p4836_p11 = pnand %p4835_p8, %p4834_p10  ;;  %p4842_p6 = scmp.lt.u32.totalorder %s4833_s15, %s5162_s11 }
  0x7a   : > { %p4841_p13 = por %p4840_p12, %p4839_p3 }
  0x7b   : > { %p4837_p1 = pneg %p4836_p11 }
  0x7c   : > { %p4843_p2 = por %p4842_p6, %p4841_p13 }
  0x7e   : > { %p4844_p5 = pnand %p4843_p2, %p4837_p1 }
  0x80   : > { %4847 = shalt.err (!%p4844_p5)
}
  0x81   : > { %s4848_s17 = scalar_lea.vmem %s5164_s12, 640  ;;  %s4947_s20 = smov [#allocation2]  }
  0x82   : > { %p4849_p10 = scmp.ne.s32.totalorder %s5164_s12, %s4848_s17  ;;  %s4853_s9 = sshll.u32 %s4947_s20, 4  ;;  %s4854_s9 = int_to_ptr.vmem [resolvable:$false] %s4853_s9 }
  0x83   : > { %s4855_s14 = scalar_lea.vmem %s4854_s9, 1280  ;;  %p4856_p7 = scmp.lt.s32.totalorder %s5164_s12, %s4854_s9 }
  0x84   : > { %p4851_p11 = pnand %p4849_p10, %p4835_p8  ;;  %p4857_p3 = scmp.lt.s32.totalorder %s4855_s14, %s4848_s17 }
  0x86   : > { %p4852_p9 = pneg %p4851_p11  ;;  %p4858_p12 = por %p4857_p3, %p4856_p7 }
  0x88   : > { %p4859_p13 = pnand %p4858_p12, %p4852_p9 }
  0x8a   : > { %4862 = shalt.err (!%p4859_p13)
}
  0x8b   : > { %4647 = dma.hbm_to_vmem [thread:$0]  (!%p5155_p4), %s5162_s11, 640, %s5164_s12, %s251_s13  }
  0x8c   : > { %p5979_p1 = scmp.ne.s32.totalorder %s5971_s28, 0 }
  0x8d   : > { %s5194_s15 = sand.u32 (!%p5979_p1), 1, %s4929_s22  }
  0x8e   : > { %271 = sbr.rel (%p5979_p1) target bundleno = 1130 (0x46a), region = 44  ;;  %s274_s25 = scalar_lea.sflag (!%p5979_p1), [#allocation3], %s5194_s15 }
  0x8f   : > { %s4610_s30 = smul.u32 (!%p5979_p1), 40, %s5194_s15 }
  0x91   : > { %s5198_s8 = scalar_lea.vmem (!%p5979_p1), [#allocation2], %s4610_s30 }
  0x95   : > { %4908 = dma.done.wait (%p5139_p0), %s274_s25, 640  }
  0x96   : > { %4910 = vsyncadd (%p5139_p0), %s274_s25, 4294966656  ;;  %p5980_p7 = scmp.eq.s32.totalorder %s5009_s27, 0 }
  0x98   : > { %4912 = dma.done.wait (%p5980_p7), [#allocation6], 8336   ;;  %p5981_p9 = pmov %p5980_p7 }
  0x99   : > { %p5982_p4 = pmov %p5980_p7 }
  0x9a   : > { %4914 = vsyncadd (%p5981_p9), [#allocation6], 4294958960 }
  0x9b   : > { %4916 = dma.done.wait (%p5982_p4), [#allocation9], 33408   ;;  %p5983_p8 = pmov %p5982_p4 }
  0x9c   : > { %v412_v0 = vld [vmem:[#allocation5 + $0x80] sm:$0xff]  ;;  %v413_v1 = vld [vmem:[#allocation5 + $0x88] sm:$0xff]  ;;  %v414_v11 = vld [vmem:[#allocation5 + $0x90] sm:$0xff]  ;;  %vm352_vm0 = vcmask 15360   ;;  %vm464_vm1 = vcmask 1041408   ;;  %vm4949_vm2 = vmmov 0  }
  0x9d   : > { %4918 = vsyncadd (%p5983_p8), [#allocation9], 4294933888  ;;  %v444_v2 = vld [vmem:[#allocation5 + $0x180] sm:$0xff]  ;;  %v5212_v3 = vpack.c.bf16 %v413_v1, %v412_v0  ;;  %v445_v4 = vld [vmem:[#allocation5 + $0x188] sm:$0xff]  ;;  %vm3062_vm3 = vcmask 1040384   ;;  %s4005_s13 = sshll.u32 %s5009_s27, 10 }
  0x9e   : > { %v396_v5 = vld [vmem:[#allocation5] sm:$0xff]  ;;  %v397_v6 = vld [vmem:[#allocation5 + $0x8] sm:$0xff]  ;;  %v5214_v7 = vpack.c.bf16 %v445_v4, %v444_v2  ;;  %v415_v13 = vld [vmem:[#allocation5 + $0x98] sm:$0xff]  ;;  %s5914_s27 = scalar_lea.hbm %s5967_s6, %s4005_s13  ;;  %s3588_s9 = scalar_lea.sflag [#allocation4], %s5194_s15 }
  0x9f   : > { %v5216_v8 = vpack.c.bf16 %v397_v6, %v396_v5  ;;  %v428_v9 = vld [vmem:[#allocation5 + $0x100] sm:$0xff]  ;;  %v429_v10 = vld [vmem:[#allocation5 + $0x108] sm:$0xff]  ;;  %4265 = vmatprep.subr.bf16.mxu0 %v5212_v3  ;;  %v446_v14 = vld [vmem:[#allocation5 + $0x190] sm:$0xff]  ;;  %v5223_v16 = vpack.c.bf16 %v415_v13, %v414_v11  ;;  %p5984_p6 = scmp.ne.s32.totalorder %s5976_s18, 0  ;;  %s4952_s30 = smov [#allocation11]  }
  0xa0   : > { %v5219_v12 = vpack.c.bf16 %v429_v10, %v428_v9  ;;  %v447_v15 = vld [vmem:[#allocation5 + $0x198] sm:$0xff]  ;;  %4297 = vmatprep.subr.bf16.mxu1 %v5214_v7  ;;  %v398_v18 = vld [vmem:[#allocation5 + $0x10] sm:$0xff]  ;;  %v416_v23 = vld [vmem:[#allocation5 + $0xa0] sm:$0xff]  ;;  %s4867_s25 = sshll.u32 %s4952_s30, 4  ;;  %s4868_s25 = int_to_ptr.vmem [resolvable:$false] %s4867_s25 }
  0xa1   : > { %4267 = vmatpush3.bf16.msra.mxu0 %v5216_v8  ;;  %v5225_v17 = vpack.c.bf16 %v447_v15, %v446_v14  ;;  %v399_v19 = vld [vmem:[#allocation5 + $0x18] sm:$0xff]  ;;  %v430_v20 = vld [vmem:[#allocation5 + $0x110] sm:$0xff]  ;;  %v417_v24 = vld [vmem:[#allocation5 + $0xa8] sm:$0xff]  ;;  %s4869_s28 = scalar_lea.vmem %s4868_s25, 2048 }
  0xa2   : > { %4299 = vmatpush3.bf16.msra.mxu1 %v5219_v12  ;;  %v5228_v21 = vpack.c.bf16 %v399_v19, %v398_v18  ;;  %v431_v22 = vld [vmem:[#allocation5 + $0x118] sm:$0xff]  ;;  %4269 = vmatprep.subr.bf16.mxu0 %v5223_v16  ;;  %v5234_v26 = vpack.c.bf16 %v417_v24, %v416_v23  ;;  %v448_v27 = vld [vmem:[#allocation5 + $0x1a0] sm:$0xff]  ;;  %v449_v28 = vld [vmem:[#allocation5 + $0x1a8] sm:$0xff] }
  0xa3   : > { %4301 = vmatprep.subr.bf16.mxu1 %v5225_v17  ;;  %v5232_v25 = vpack.c.bf16 %v431_v22, %v430_v20  ;;  %v400_v29 = vld [vmem:[#allocation5 + $0x20] sm:$0xff]  ;;  %v5236_v30 = vpack.c.bf16 %v449_v28, %v448_v27  ;;  %v401_v31 = vld [vmem:[#allocation5 + $0x28] sm:$0xff]  ;;  %v418_v35 = vld [vmem:[#allocation5 + $0xb0] sm:$0xff] }
  0xa4   : > { %v432_v32 = vld [vmem:[#allocation5 + $0x120] sm:$0xff]  ;;  %v433_v33 = vld [vmem:[#allocation5 + $0x128] sm:$0xff]  ;;  %v5239_v34 = vpack.c.bf16 %v401_v31, %v400_v29  ;;  %v419_v36 = vld [vmem:[#allocation5 + $0xb8] sm:$0xff] }
  0xa5   : > { %4271 = vmatpush3.bf16.msra.mxu0 %v5228_v21  ;;  %v450_v37 = vld [vmem:[#allocation5 + $0x1b0] sm:$0xff]  ;;  %v5243_v38 = vpack.c.bf16 %v433_v33, %v432_v32  ;;  %v5245_v39 = vpack.c.bf16 %v419_v36, %v418_v35  ;;  %v451_v40 = vld [vmem:[#allocation5 + $0x1b8] sm:$0xff]  ;;  %v420_v46 = vld [vmem:[#allocation5 + $0xc0] sm:$0xff] }
  0xa6   : > { %4303 = vmatpush3.bf16.msra.mxu1 %v5232_v25  ;;  %4273 = vmatprep.subr.bf16.mxu0 %v5234_v26  ;;  %v402_v41 = vld [vmem:[#allocation5 + $0x30] sm:$0xff]  ;;  %v403_v42 = vld [vmem:[#allocation5 + $0x38] sm:$0xff]  ;;  %v5248_v43 = vpack.c.bf16 %v451_v40, %v450_v37  ;;  %v421_v47 = vld [vmem:[#allocation5 + $0xc8] sm:$0xff] }
  0xa7   : > { %4305 = vmatprep.subr.bf16.mxu1 %v5236_v30  ;;  %v434_v44 = vld [vmem:[#allocation5 + $0x130] sm:$0xff]  ;;  %v435_v45 = vld [vmem:[#allocation5 + $0x138] sm:$0xff]  ;;  %v452_v48 = vld [vmem:[#allocation5 + $0x1c0] sm:$0xff]  ;;  %v5251_v50 = vpack.c.bf16 %v403_v42, %v402_v41  ;;  %v5257_v52 = vpack.c.bf16 %v421_v47, %v420_v46 }
  0xa8   : > { %v453_v49 = vld [vmem:[#allocation5 + $0x1c8] sm:$0xff]  ;;  %v5255_v51 = vpack.c.bf16 %v435_v45, %v434_v44  ;;  %v404_v53 = vld [vmem:[#allocation5 + $0x40] sm:$0xff]  ;;  %v422_v58 = vld [vmem:[#allocation5 + $0xd0] sm:$0xff] }
  0xa9   : > { %4275 = vmatpush3.bf16.msra.mxu0 %v5239_v34  ;;  %v405_v54 = vld [vmem:[#allocation5 + $0x48] sm:$0xff]  ;;  %v436_v55 = vld [vmem:[#allocation5 + $0x140] sm:$0xff]  ;;  %v5260_v56 = vpack.c.bf16 %v453_v49, %v452_v48  ;;  %v423_v59 = vld [vmem:[#allocation5 + $0xd8] sm:$0xff] }
  0xaa   : > { %4307 = vmatpush3.bf16.msra.mxu1 %v5243_v38  ;;  %4277 = vmatprep.subr.bf16.mxu0 %v5245_v39  ;;  %v437_v57 = vld [vmem:[#allocation5 + $0x148] sm:$0xff]  ;;  %v454_v60 = vld [vmem:[#allocation5 + $0x1d0] sm:$0xff]  ;;  %v455_v61 = vld [vmem:[#allocation5 + $0x1d8] sm:$0xff]  ;;  %v5263_v63 = vpack.c.bf16 %v405_v54, %v404_v53  ;;  %v5269_v5 = vpack.c.bf16 %v423_v59, %v422_v58 }
  0xab   : > { %4309 = vmatprep.subr.bf16.mxu1 %v5248_v43  ;;  %v406_v62 = vld [vmem:[#allocation5 + $0x50] sm:$0xff]  ;;  %v407_v0 = vld [vmem:[#allocation5 + $0x58] sm:$0xff]  ;;  %v5267_v4 = vpack.c.bf16 %v437_v57, %v436_v55  ;;  %v424_v6 = vld [vmem:[#allocation5 + $0xe0] sm:$0xff]  ;;  %v5272_v11 = vpack.c.bf16 %v455_v61, %v454_v60 }
  0xac   : > { %v438_v1 = vld [vmem:[#allocation5 + $0x150] sm:$0xff]  ;;  %v439_v2 = vld [vmem:[#allocation5 + $0x158] sm:$0xff]  ;;  %v425_v9 = vld [vmem:[#allocation5 + $0xe8] sm:$0xff]  ;;  %v5275_v20 = vpack.c.bf16 %v407_v0, %v406_v62 }
  0xad   : > { %4279 = vmatpush3.bf16.msra.mxu0 %v5251_v50  ;;  %v456_v10 = vld [vmem:[#allocation5 + $0x1e0] sm:$0xff]  ;;  %v457_v13 = vld [vmem:[#allocation5 + $0x1e8] sm:$0xff]  ;;  %v5277_v22 = vpack.c.bf16 %v439_v2, %v438_v1  ;;  %v426_v23 = vld [vmem:[#allocation5 + $0xf0] sm:$0xff]  ;;  %v5281_v27 = vpack.c.bf16 %v425_v9, %v424_v6 }
  0xae   : > { %4311 = vmatpush3.bf16.msra.mxu1 %v5255_v51  ;;  %4281 = vmatprep.subr.bf16.mxu0 %v5257_v52  ;;  %v408_v14 = vld [vmem:[#allocation5 + $0x60] sm:$0xff]  ;;  %v409_v15 = vld [vmem:[#allocation5 + $0x68] sm:$0xff]  ;;  %v427_v24 = vld [vmem:[#allocation5 + $0xf8] sm:$0xff]  ;;  %v5283_v28 = vpack.c.bf16 %v457_v13, %v456_v10 }
  0xaf   : > { %4313 = vmatprep.subr.bf16.mxu1 %v5260_v56  ;;  %v440_v18 = vld [vmem:[#allocation5 + $0x160] sm:$0xff]  ;;  %v441_v19 = vld [vmem:[#allocation5 + $0x168] sm:$0xff]  ;;  %v5285_v29 = vpack.c.bf16 %v409_v15, %v408_v14  ;;  %v458_v31 = vld [vmem:[#allocation5 + $0x1f0] sm:$0xff]  ;;  %v5298_v45 = vpack.c.bf16 %v427_v24, %v426_v23 }
  0xb0   : > { %v324_v32 = vld [vmem:[%s5198_s8 + $0x8] sm:$0xff]  ;;  %v326_v33 = vld [vmem:[%s5198_s8 + $0x18] sm:$0xff]  ;;  %v5290_v35 = vpack.c.bf16 %v441_v19, %v440_v18  ;;  %v5293_v41 = vld [vmem:[%s5198_s8] sm:$0xff] }
  0xb1   : > { %4283 = vmatpush3.bf16.msra.mxu0 %v5263_v63  ;;  %v459_v36 = vld [vmem:[#allocation5 + $0x1f8] sm:$0xff]  ;;  %v334_v37 = vrot.slane %v324_v32, 4  ;;  %v346_v40 = vrot.slane %v326_v33, 4  ;;  %v5296_v42 = vld [vmem:[%s5198_s8 + $0x10] sm:$0xff]  ;;  %v361_v44 = vmul.f32 %v324_v32, %v324_v32  ;;  %v328_v46 = vrot.slane %v5293_v41, 4  ;;  %v410_v53 = vld [vmem:[#allocation5 + $0x70] sm:$0xff] }
  0xb2   : > { %4315 = vmatpush3.bf16.msra.mxu1 %v5267_v4  ;;  %4285 = vmatprep.subr.bf16.mxu0 %v5269_v5  ;;  %v340_v47 = vrot.slane %v5296_v42, 4  ;;  %v5303_v48 = vld [vmem:[%s5198_s8 + $0x20] sm:$0xff]  ;;  %v363_v49 = vmul.f32 %v326_v33, %v326_v33  ;;  %v5310_v60 = vpack.c.bf16 %v459_v36, %v458_v31 }
  0xb3   : > { %4317 = vmatprep.subr.bf16.mxu1 %v5272_v11  ;;  %v411_v54 = vld [vmem:[#allocation5 + $0x78] sm:$0xff]  ;;  %v335_v55 = vadd.f32 %v334_v37, %v324_v32  ;;  %v347_v57 = vadd.f32 %v346_v40, %v326_v33  ;;  %v353_v58 = vsel %vm352_vm0, %v5303_v48, 0.0  ;;  %v371_v59 = vrot.slane %v361_v44, 4  ;;  %v442_v1 = vld [vmem:[#allocation5 + $0x170] sm:$0xff] }
  0xb4   : > { %v329_v61 = vadd.f32 %v328_v46, %v5293_v41  ;;  %v341_v62 = vadd.f32 %v340_v47, %v5296_v42  ;;  %v354_v0 = vrot.slane %v353_v58, 4  ;;  %v443_v2 = vld [vmem:[#allocation5 + $0x178] sm:$0xff]  ;;  %v383_v13 = vrot.slane %v363_v49, 4 }
  0xb5   : > { %4287 = vmatpush3.bf16.msra.mxu0 %v5275_v20  ;;  %v336_v6 = vrot.slane %v335_v55, 2  ;;  %v348_v9 = vrot.slane %v347_v57, 2  ;;  %v372_v10 = vadd.f32 %v371_v59, %v361_v44  ;;  %v5315_v14 = vpack.c.bf16 %v411_v54, %v410_v53 }
  0xb6   : > { %4319 = vmatpush3.bf16.msra.mxu1 %v5277_v22  ;;  %4289 = vmatprep.subr.bf16.mxu0 %v5281_v27  ;;  %v330_v15 = vrot.slane %v329_v61, 2  ;;  %v342_v18 = vrot.slane %v341_v62, 2  ;;  %v355_v19 = vadd.f32 %v354_v0, %v353_v58  ;;  %v384_v32 = vadd.f32 %v383_v13, %v363_v49 }
  0xb7   : > { %4321 = vmatprep.subr.bf16.mxu1 %v5283_v28  ;;  %v337_v23 = vadd.f32 %v336_v6, %v335_v55  ;;  %v349_v24 = vadd.f32 %v348_v9, %v347_v57  ;;  %v373_v31 = vrot.slane %v372_v10, 2  ;;  %v5320_v33 = vpack.c.bf16 %v443_v2, %v442_v1  ;;  %v5326_v2 = vld [vmem:[#allocation5 + $0x200] sm:$0x3] }
  0xb8   : > { %v331_v36 = vadd.f32 %v330_v15, %v329_v61  ;;  %v343_v37 = vadd.f32 %v342_v18, %v341_v62  ;;  %v356_v40 = vrot.slane %v355_v19, 2  ;;  %v385_v53 = vrot.slane %v384_v32, 2  ;;  %v916_v18 = vld [vmem:[%s5963_s2 + $0x90] sm:$0xff] }
  0xb9   : > { %4291 = vmatpush3.bf16.msra.mxu0 %v5285_v29  ;;  %v338_v44 = vrot.slane %v337_v23, 1  ;;  %v350_v46 = vrot.slane %v349_v24, 1  ;;  %v374_v47 = vadd.f32 %v373_v31, %v372_v10  ;;  %v4948_v1 = vmov 0.0  }
  0xba   : > { %4323 = vmatpush3.bf16.msra.mxu1 %v5290_v35  ;;  %4293 = vmatprep.subr.bf16.mxu0 %v5298_v45  ;;  %v332_v54 = vrot.slane %v331_v36, 1  ;;  %v344_v55 = vrot.slane %v343_v37, 1  ;;  %v357_v57 = vadd.f32 %v356_v40, %v355_v19  ;;  %v386_v0 = vadd.f32 %v385_v53, %v384_v32  ;;  %v908_v32 = vld [vmem:[%s5963_s2 + $0x50] sm:$0xff]  ;;  %v915_v40 = vld [vmem:[%s5963_s2 + $0x88] sm:$0xff]  ;;  %v926_v53 = vld [vmem:[%s5963_s2 + $0xe0] sm:$0xff] }
  0xbb   : > { %4325 = vmatprep.subr.bf16.mxu1 %v5310_v60  ;;  %v339_v49 = vadd.f32 %v338_v44, %v337_v23  ;;  %v351_v58 = vadd.f32 %v350_v46, %v349_v24  ;;  %v375_v59 = vrot.slane %v374_v47, 1  ;;  %v919_v44 = vld [vmem:[%s5963_s2 + $0xa8] sm:$0xff]  ;;  %v924_v46 = vld [vmem:[%s5963_s2 + $0xd0] sm:$0xff] }
  0xbc   : > { %v333_v61 = vadd.f32 %v332_v54, %v331_v36  ;;  %v345_v62 = vadd.f32 %v344_v55, %v343_v37  ;;  %v358_v6 = vrot.slane %v357_v57, 1  ;;  %v387_v9 = vrot.slane %v386_v0, 1  ;;  %v910_v36 = vld [vmem:[%s5963_s2 + $0x60] sm:$0xff] }
  0xbd   : > { %4295 = vmatpush3.bf16.msra.mxu0 %v5315_v14  ;;  %532 = vmatprep.mubr.f32.mxu0 %v339_v49  ;;  %v376_v13 = vadd.f32 %v375_v59, %v374_v47  ;;  %v921_v47 = vld [vmem:[%s5963_s2 + $0xb8] sm:$0xff]  ;;  %v5457_v55 = vpack.c.bf16 %v915_v40, %v910_v36  ;;  %v918_v49 = vld [vmem:[%s5963_s2 + $0xa0] sm:$0xff]  ;;  %v920_v59 = vld [vmem:[%s5963_s2 + $0xb0] sm:$0xff] }
  0xbe   : > { %4327 = vmatpush3.bf16.msra.mxu1 %v5320_v33  ;;  %4184 = vmatprep.subr.mxu0 %v4948_v1  ;;  %v359_v10 = vadd.f32 %v358_v6, %v357_v57  ;;  %v388_v15 = vadd.f32 %v387_v9, %v386_v0  ;;  %v5459_v57 = vpack.c.bf16 %v924_v46, %v919_v44  ;;  %v931_v6 = vld [vmem:[%s5963_s2 + $0x108] sm:$0xff]  ;;  %v936_v9 = vld [vmem:[%s5963_s2 + $0x130] sm:$0xff]  ;;  %v961_v36 = vld [vmem:[%s5963_s2 + $0x1f8] sm:$0xff] }
  0xbf   : > { %602 = vmatprep.mubr.f32.mxu1 %v351_v58  ;;  %4329 = vmatprep.subr.bf16.mxu1 %v5212_v3  ;;  %v360_v3 = vmul.f32 %v5293_v41, %v5293_v41  ;;  %v923_v58 = vld [vmem:[%s5963_s2 + $0xc8] sm:$0xff]  ;;  %v5471_v0 = vpack.c.bf16 %v926_v53, %v921_v47  ;;  %v966_v44 = vld [vmem:[%s5963_s2 + $0x220] sm:$0xff]  ;;  %v960_v46 = vld [vmem:[%s5963_s2 + $0x1f0] sm:$0xff] }
  0xc0   : > { %533 = vmatmul.mubr.f32.vlgmr.msra.gmra.mrb[0].mxu0 %v333_v61  ;;  %v925_v61 = vld [vmem:[%s5963_s2 + $0xd8] sm:$0xff]  ;;  %v5625_v53 = vpack.c.bf16 %v966_v44, %v961_v36  ;;  %v927_v36 = vld [vmem:[%s5963_s2 + $0xe8] sm:$0xff]  ;;  %v932_v44 = vld [vmem:[%s5963_s2 + $0x110] sm:$0xff] }
  0xc1   : > { %603 = vmatmul.mubr.f32.vlgmr.msra.gmra.mrb[0].mxu1 %v345_v62  ;;  %4185 = vmatpush3.msk.msra.mxu0 %vm464_vm1, %v5326_v2  ;;  %v929_v62 = vld [vmem:[%s5963_s2 + $0xf8] sm:$0xff] }
  0xc2   : > { %4186 = vmatprep.mubr.msk.f32.mxu0 %vm4949_vm2, %v4948_v1  ;;  %4331 = vmatpush3.bf16.msra.mxu1 %v5216_v8  ;;  %v364_v8 = vmul.f32 %v5303_v48, %v5303_v48  ;;  %v914_v48 = vld [vmem:[%s5963_s2 + $0x80] sm:$0xff]  ;;  %v965_v47 = vld [vmem:[%s5963_s2 + $0x218] sm:$0xff] }
  0xc3   : > { %4361 = vmatprep.subr.bf16.mxu0 %v5214_v7  ;;  %4333 = vmatprep.subr.bf16.mxu1 %v5223_v16  ;;  %v362_v7 = vmul.f32 %v5296_v42, %v5296_v42  ;;  %v365_v16 = vrot.slane %v360_v3, 4  ;;  %v905_v42 = vld [vmem:[%s5963_s2 + $0x38] sm:$0xff] }
  0xc4   : > { %4187 = vmatmul.mubr.msk.f32.vlgmr.msra.gmra.mrb[2].mxu0 %vm352_vm0, %v359_v10  ;;  %745 = vmatprep.mubr.f32.mxu1 %v376_v13  ;;  %v5491_v10 = vpack.c.bf16 %v923_v58, %v918_v49  ;;  %v5495_v13 = vpack.c.bf16 %v925_v61, %v920_v59  ;;  %v5627_v49 = vpack.c.bf16 %v965_v47, %v960_v46  ;;  %v969_v58 = vld [vmem:[%s5963_s2 + $0x238] sm:$0xff]  ;;  %v974_v59 = vld [vmem:[%s5963_s2 + $0x260] sm:$0xff]  ;;  %v947_v47 = vld [vmem:[%s5963_s2 + $0x188] sm:$0xff] }
  0xc5   : > { %4363 = vmatpush3.bf16.msra.mxu0 %v5219_v12  ;;  %815 = vmatprep.mubr.f32.mxu0 %v388_v15  ;;  %v389_v12 = vsel %vm352_vm0, %v364_v8, 0.0  ;;  %v933_v8 = vld [vmem:[%s5963_s2 + $0x118] sm:$0xff]  ;;  %v5637_v61 = vpack.c.bf16 %v974_v59, %v969_v58  ;;  %v967_v59 = vld [vmem:[%s5963_s2 + $0x228] sm:$0xff] }
  0xc6   : > { %4335 = vmatpush3.bf16.msra.mxu1 %v5228_v21  ;;  %4365 = vmatprep.subr.bf16.mxu0 %v5225_v17  ;;  %v377_v17 = vrot.slane %v362_v7, 4  ;;  %v366_v21 = vadd.f32 %v365_v16, %v360_v3  ;;  %v390_v41 = vrot.slane %v389_v12, 4  ;;  %v928_v3 = vld [vmem:[%s5963_s2 + $0xf0] sm:$0xff]  ;;  %v5509_v16 = vpack.c.bf16 %v936_v9, %v931_v6  ;;  %v971_v6 = vld [vmem:[%s5963_s2 + $0x248] sm:$0xff]  ;;  %v957_v58 = vld [vmem:[%s5963_s2 + $0x1d8] sm:$0xff] }
  0xc7   : > { %4337 = vmatprep.subr.bf16.mxu1 %v5234_v26 }
  0xc8   : > { %v367_v26 = vrot.slane %v366_v21, 2 }
  0xc9   : > { %4367 = vmatpush3.bf16.msra.mxu0 %v5232_v25  ;;  %v378_v25 = vadd.f32 %v377_v17, %v362_v7  ;;  %v930_v7 = vld [vmem:[%s5963_s2 + $0x100] sm:$0xff]  ;;  %v939_v17 = vld [vmem:[%s5963_s2 + $0x148] sm:$0xff] }
  0xca   : > { %4339 = vmatpush3.bf16.msra.mxu1 %v5239_v34  ;;  %4369 = vmatprep.subr.bf16.mxu0 %v5236_v30  ;;  %v391_v30 = vadd.f32 %v390_v41, %v389_v12  ;;  %v935_v12 = vld [vmem:[%s5963_s2 + $0x128] sm:$0xff]  ;;  %v941_v41 = vld [vmem:[%s5963_s2 + $0x158] sm:$0xff] }
  0xcb   : > { %4341 = vmatprep.subr.bf16.mxu1 %v5245_v39  ;;  %v379_v34 = vrot.slane %v378_v25, 2 }
  0xcc   : > { %v392_v39 = vrot.slane %v391_v30, 2 }
  0xcd   : > { %4371 = vmatpush3.bf16.msra.mxu0 %v5243_v38  ;;  %v368_v38 = vadd.f32 %v367_v26, %v366_v21  ;;  %v944_v21 = vld [vmem:[%s5963_s2 + $0x170] sm:$0xff]  ;;  %v5527_v26 = vpack.c.bf16 %v933_v8, %v928_v3  ;;  %v970_v8 = vld [vmem:[%s5963_s2 + $0x240] sm:$0xff] }
  0xce   : > { %4343 = vmatpush3.bf16.msra.mxu1 %v5251_v50  ;;  %4373 = vmatprep.subr.bf16.mxu0 %v5248_v43  ;;  %v380_v43 = vadd.f32 %v379_v34, %v378_v25  ;;  %v946_v25 = vld [vmem:[%s5963_s2 + $0x180] sm:$0xff]  ;;  %v5533_v34 = vpack.c.bf16 %v944_v21, %v939_v17  ;;  %v976_v3 = vld [vmem:[%s5963_s2 + $0x270] sm:$0xff]  ;;  %v4950_v21 = vmov 0.0|0.0  }
  0xcf   : > { %4345 = vmatprep.subr.bf16.mxu1 %v5257_v52  ;;  %v369_v50 = vrot.slane %v368_v38, 1  ;;  %v899_v52 = vld [vmem:[%s5963_s2 + $0x8] sm:$0xff] }
  0xd1   : > { %4375 = vmatpush3.bf16.msra.mxu0 %v5255_v51  ;;  %v393_v51 = vadd.f32 %v392_v39, %v391_v30  ;;  %v5531_v30 = vpack.c.bf16 %v935_v12, %v930_v7  ;;  %v943_v39 = vld [vmem:[%s5963_s2 + $0x168] sm:$0xff]  ;;  %v5661_v12 = vpack.c.bf16 %v976_v3, %v971_v6 }
  0xd2   : > { %4347 = vmatpush3.bf16.msra.mxu1 %v5263_v63  ;;  %4377 = vmatprep.subr.bf16.mxu0 %v5260_v56  ;;  %v381_v56 = vrot.slane %v380_v43, 1  ;;  %v904_v63 = vld [vmem:[%s5963_s2 + $0x30] sm:$0xff]  ;;  %v975_v7 = vld [vmem:[%s5963_s2 + $0x268] sm:$0xff] }
  0xd3   : > { %4349 = vmatprep.subr.bf16.mxu1 %v5269_v5  ;;  %v906_v5 = vld [vmem:[%s5963_s2 + $0x40] sm:$0xff]  ;;  %v5663_v17 = vpack.c.bf16 %v975_v7, %v970_v8 }
  0xd5   : > { %4379 = vmatpush3.bf16.msra.mxu0 %v5267_v4  ;;  %v901_v4 = vld [vmem:[%s5963_s2 + $0x18] sm:$0xff] }
  0xd6   : > { %4351 = vmatpush3.bf16.msra.mxu1 %v5275_v20  ;;  %4381 = vmatprep.subr.bf16.mxu0 %v5272_v11  ;;  %v370_v11 = vadd.f32 %v369_v50, %v368_v38  ;;  %v394_v20 = vrot.slane %v393_v51, 1  ;;  %v938_v38 = vld [vmem:[%s5963_s2 + $0x140] sm:$0xff]  ;;  %v5545_v50 = vpack.c.bf16 %v946_v25, %v941_v41 }
  0xd7   : > { %4353 = vmatprep.subr.bf16.mxu1 %v5281_v27  ;;  %v903_v27 = vld [vmem:[%s5963_s2 + $0x28] sm:$0xff] }
  0xd8   : > { %v395_v19 = vadd.f32 %v394_v20, %v393_v51  ;;  %v945_v51 = vld [vmem:[%s5963_s2 + $0x178] sm:$0xff] }
  0xd9   : > { %4383 = vmatpush3.bf16.msra.mxu0 %v5277_v22  ;;  %v898_v22 = vld [vmem:[%s5963_s2] sm:$0xff] }
  0xda   : > { %4355 = vmatpush3.bf16.msra.mxu1 %v5285_v29  ;;  %4385 = vmatprep.subr.bf16.mxu0 %v5283_v28  ;;  %v900_v28 = vld [vmem:[%s5963_s2 + $0x10] sm:$0xff]  ;;  %v5393_v29 = vpack.c.bf16 %v904_v63, %v899_v52  ;;  %v5413_v23 = vpack.c.bf16 %v903_v27, %v898_v22  ;;  %v949_v52 = vld [vmem:[%s5963_s2 + $0x198] sm:$0xff]  ;;  %v951_v63 = vld [vmem:[%s5963_s2 + $0x1a8] sm:$0xff] }
  0xdb   : > { %4357 = vmatprep.subr.bf16.mxu1 %v5298_v45  ;;  %v909_v45 = vld [vmem:[%s5963_s2 + $0x58] sm:$0xff]  ;;  %v5419_v24 = vpack.c.bf16 %v905_v42, %v900_v28  ;;  %v948_v22 = vld [vmem:[%s5963_s2 + $0x190] sm:$0xff]  ;;  %v950_v42 = vld [vmem:[%s5963_s2 + $0x1a0] sm:$0xff] }
  0xdc   : > { %v5421_v31 = vpack.c.bf16 %v914_v48, %v909_v45  ;;  %v953_v27 = vld [vmem:[%s5963_s2 + $0x1b8] sm:$0xff]  ;;  %v955_v45 = vld [vmem:[%s5963_s2 + $0x1c8] sm:$0xff] }
  0xdd   : > { %4387 = vmatpush3.bf16.msra.mxu0 %v5290_v35  ;;  %v5395_v35 = vpack.c.bf16 %v906_v5, %v901_v4  ;;  %v956_v4 = vld [vmem:[%s5963_s2 + $0x1d0] sm:$0xff]  ;;  %v5563_v5 = vpack.c.bf16 %v943_v39, %v938_v38  ;;  %v5587_v48 = vpack.c.bf16 %v953_v27, %v948_v22  ;;  %v907_v22 = vld [vmem:[%s5963_s2 + $0x48] sm:$0xff]  ;;  %v5676_v27 = vld [vmem:[#allocation7] sm:$0x1] }
  0xde   : > { %4359 = vmatpush3.bf16.msra.mxu1 %v5315_v14  ;;  %4389 = vmatprep.subr.bf16.mxu0 %v5310_v60  ;;  %v382_v60 = vadd.f32 %v381_v56, %v380_v43  ;;  %v911_v14 = vld [vmem:[%s5963_s2 + $0x68] sm:$0xff]  ;;  %v940_v43 = vld [vmem:[%s5963_s2 + $0x150] sm:$0xff]  ;;  %v954_v56 = vld [vmem:[%s5963_s2 + $0x1c0] sm:$0xff]  ;;  %v5578_v28 = vpack.c.bf16 %v956_v4, %v951_v63 }
  0xdf   : > { %4189 = vmatprep.subr.mxu1 %v4948_v1  ;;  %v5434_v37 = vpack.c.bf16 %v916_v18, %v911_v14  ;;  %v5569_v20 = vpack.c.bf16 %v954_v56, %v949_v52  ;;  %v959_v14 = vld [vmem:[%s5963_s2 + $0x1e8] sm:$0xff]  ;;  %v964_v18 = vld [vmem:[%s5963_s2 + $0x210] sm:$0xff]  ;;  %v902_v4 = vld [vmem:[%s5963_s2 + $0x20] sm:$0xff] }
  0xe1   : > { %4391 = vmatpush3.bf16.msra.mxu0 %v5320_v33  ;;  %746 = vmatmul.mubr.f32.vlgmr.msra.gmra.mrb[2].mxu1 %v370_v11  ;;  %v913_v33 = vld [vmem:[%s5963_s2 + $0x78] sm:$0xff]  ;;  %v5567_v11 = vpack.c.bf16 %v945_v51, %v940_v43 }
  0xe2   : > { %4190 = vmatpush3.msk.msra.mxu1 %vm464_vm1, %v5326_v2  ;;  %4191 = vmatprep.mubr.msk.f32.mxu1 %vm4949_vm2, %v4948_v1  ;;  %v5453_v54 = vpack.c.bf16 %v913_v33, %v908_v32  ;;  %v934_v2 = vld [vmem:[%s5963_s2 + $0x120] sm:$0xff]  ;;  %v963_v33 = vld [vmem:[%s5963_s2 + $0x208] sm:$0xff] }
  0xe3   : > { %4393 = vmatprep.subr.bf16.mxu0 %v5393_v29  ;;  %4425 = vmatprep.subr.bf16.mxu1 %v5395_v35  ;;  %v5497_v15 = vpack.c.bf16 %v934_v2, %v929_v62  ;;  %v958_v32 = vld [vmem:[%s5963_s2 + $0x1e0] sm:$0xff]  ;;  %v968_v62 = vld [vmem:[%s5963_s2 + $0x230] sm:$0xff]  ;;  %v973_v2 = vld [vmem:[%s5963_s2 + $0x258] sm:$0xff] }
  0xe4   : > { %816 = vmatmul.mubr.f32.vlgmr.msra.gmra.mrb[4].mxu0 %v382_v60  ;;  %v5591_v60 = vpack.c.bf16 %v955_v45, %v950_v42  ;;  %v5613_v40 = vpack.c.bf16 %v963_v33, %v958_v32  ;;  %v5649_v9 = vpack.c.bf16 %v973_v2, %v968_v62  ;;  %v5678_v42 = vpack.c.bf16 %v907_v22, %v902_v4  ;;  %v922_v33 = vld [vmem:[%s5963_s2 + $0xc0] sm:$0xff]  ;;  %v972_v62 = vld [vmem:[%s5963_s2 + $0x250] sm:$0xff]  ;;  %v977_v2 = vld [vmem:[%s5963_s2 + $0x278] sm:$0xff] }
  0xe5   : > { %4192 = vmatmul.mubr.msk.f32.vlgmr.msra.gmra.mrb[4].mxu1 %vm352_vm0, %v395_v19  ;;  %4395 = vmatpush1.bf16.msra.mxu0 %v5413_v23  ;;  %v5602_v19 = vpack.c.bf16 %v964_v18, %v959_v14  ;;  %v912_v14 = vld [vmem:[%s5963_s2 + $0x70] sm:$0xff]  ;;  %v917_v18 = vld [vmem:[%s5963_s2 + $0x98] sm:$0xff]  ;;  %v5767_v8 = vpack.c.bf16 %v977_v2, %v972_v62 }
  0xe6   : > { %4427 = vmatpush1.bf16.msra.mxu1 %v5419_v24  ;;  %4397 = vmatprep.subr.bf16.mxu0 %v5421_v31  ;;  %v5692_v32 = vpack.c.bf16 %v917_v18, %v912_v14  ;;  %v1486_v18 = vld [vmem:[#allocation8 + $0xe8] sm:$0xff] }
  0xe7   : > { %4429 = vmatprep.subr.bf16.mxu1 %v5434_v37  ;;  %1042 = vmatprep.mubr.f32.mxu0 %v4948_v1 }
  0xe8   : > { %1113 = vmatprep.mubr.f32.mxu1 %v4948_v1 }
  0xe9   : > { %4399 = vmatpush1.bf16.msra.mxu0 %v5453_v54 }
  0xea   : > { %4431 = vmatpush1.bf16.msra.mxu1 %v5457_v55  ;;  %4401 = vmatprep.subr.bf16.mxu0 %v5459_v57 }
  0xeb   : > { %4433 = vmatprep.subr.bf16.mxu1 %v5471_v0 }
  0xed   : > { %4403 = vmatpush1.bf16.msra.mxu0 %v5491_v10 }
  0xee   : > { %4435 = vmatpush1.bf16.msra.mxu1 %v5495_v13  ;;  %4405 = vmatprep.subr.bf16.mxu0 %v5497_v15 }
  0xef   : > { %4437 = vmatprep.subr.bf16.mxu1 %v5509_v16 }
  0xf1   : > { %4407 = vmatpush1.bf16.msra.mxu0 %v5527_v26 }
  0xf2   : > { %4439 = vmatpush1.bf16.msra.mxu1 %v5531_v30  ;;  %4409 = vmatprep.subr.bf16.mxu0 %v5533_v34 }
  0xf3   : > { %4441 = vmatprep.subr.bf16.mxu1 %v5545_v50 }
  0xf5   : > { %4411 = vmatpush1.bf16.msra.mxu0 %v5563_v5 }
  0xf6   : > { %4443 = vmatpush1.bf16.msra.mxu1 %v5567_v11  ;;  %4413 = vmatprep.subr.bf16.mxu0 %v5569_v20 }
  0xf7   : > { %4445 = vmatprep.subr.bf16.mxu1 %v5578_v28 }
  0xf9   : > { %4415 = vmatpush1.bf16.msra.mxu0 %v5587_v48 }
  0xfa   : > { %4447 = vmatpush1.bf16.msra.mxu1 %v5591_v60  ;;  %4417 = vmatprep.subr.bf16.mxu0 %v5602_v19 }
  0xfb   : > { %4449 = vmatprep.subr.bf16.mxu1 %v5625_v53 }
  0xfd   : > { %4419 = vmatpush1.bf16.msra.mxu0 %v5613_v40 }
  0xfe   : > { %4451 = vmatpush1.bf16.msra.mxu1 %v5627_v49  ;;  %4421 = vmatprep.subr.bf16.mxu0 %v5637_v61 }
  0xff   : > { %4453 = vmatprep.subr.bf16.mxu1 %v5661_v12 }
 0x101   : > { %4423 = vmatpush1.bf16.msra.mxu0 %v5649_v9 }
 0x102   : > { %4455 = vmatpush1.bf16.msra.mxu1 %v5663_v17  ;;  %4456 = vmatprep.subr.bf16.mxu0 %v4950_v21 }
 0x103   : > { %4481 = vmatprep.subr.bf16.mxu1 %v5393_v29 }
 0x193   : > { %v4038_v41 = vpop.f32.mrb[0].mxu0 }
 0x194   : > { %v4073_v25 = vpop.f32.mrb[0].mxu1  ;;  %v4039_v38 = vpop.f32.mrb[1].mxu0 }
 0x195   : > { %v4040_v39 = vadd.f32 %v4039_v38, %v4038_v41  ;;  %v4074_v43 = vpop.f32.mrb[1].mxu1 }
 0x196   : > { %v4075_v51 = vadd.f32 %v4074_v43, %v4073_v25  ;;  %v1473_v43 = vld [vmem:[#allocation8 + $0x80] sm:$0xff] }
 0x197   : > { %v674_v52 = vpop.f32.mrb[2].mxu0 }
 0x198   : > { %v605_v56 = vadd.f32 %v4075_v51, %v4040_v39  ;;  %v4188_v63 = vpop.f32.mrb[3].mxu0  ;;  %v1477_v51 = vld [vmem:[#allocation8 + $0xa0] sm:$0xff] }
 0x199   : > { %v1478_v63 = vld [vmem:[#allocation8 + $0xa8] sm:$0xff]  ;;  %v3744_v4 = vcombine.low %v1473_v43, %v1477_v51 }
 0x19a   : > { %v675_v29 = vadd.f32 %v674_v52, %v605_v56  ;;  %v1474_v52 = vld [vmem:[#allocation8 + $0x88] sm:$0xff]  ;;  %v3745_v56 = vcombine.high %v1473_v43, %v1477_v51  ;;  %v1537_v43 = vld [vmem:[#allocation8 + $0x280] sm:$0xff] }
 0x19b   : > { %v3747_v22 = vcombine.high %v1474_v52, %v1478_v63  ;;  %v1541_v51 = vld [vmem:[#allocation8 + $0x2a0] sm:$0xff] }
 0x19c   : > { %v5681_v45 = vmul.f32 %v5676_v27, %v675_v29  ;;  %v1485_v29 = vld [vmem:[#allocation8 + $0xe0] sm:$0xff] }
 0x19e   : > { %1043 = vmatmul.mubr.f32.vlgmr.msra.gmra.mrb[6].mxu0 %v5681_v45  ;;  %1114 = vmatmul.mubr.f32.vlgmr.msra.gmra.mrb[6].mxu1 %v5681_v45  ;;  %v894_v39 = vmul.f32 %v5681_v45, %v5681_v45 }
 0x19f   : > { %4458 = vmatpush3.bf16.msra.mxu0 %v5678_v42  ;;  %4483 = vmatpush1.bf16.msra.mxu1 %v5413_v23  ;;  %v5707_v23 = vpack.c.bf16 %v927_v36, %v922_v33  ;;  %v1493_v33 = vld [vmem:[#allocation8 + $0x120] sm:$0xff] }
 0x1a0   : > { %4459 = vmatprep.subr.bf16.mxu0 %v4950_v21  ;;  %4485 = vmatprep.subr.bf16.mxu1 %v5421_v31  ;;  %v937_v31 = vld [vmem:[%s5963_s2 + $0x138] sm:$0xff] }
 0x1a1   : > { %4226 = vmatprep.mubr.msk.f32.mxu0 %vm4949_vm2, %v4948_v1  ;;  %1254 = vmatprep.mubr.f32.mxu1 %v4948_v1  ;;  %v5719_v46 = vpack.c.bf16 %v937_v31, %v932_v44  ;;  %v1490_v44 = vld [vmem:[#allocation8 + $0x108] sm:$0xff] }
 0x1a2   : > { %v1494_v31 = vld [vmem:[#allocation8 + $0x128] sm:$0xff] }
 0x1a3   : > { %4461 = vmatpush3.bf16.msra.mxu0 %v5692_v32  ;;  %4487 = vmatpush1.bf16.msra.mxu1 %v5453_v54  ;;  %v942_v54 = vld [vmem:[%s5963_s2 + $0x160] sm:$0xff] }
 0x1a4   : > { %4462 = vmatprep.subr.bf16.mxu0 %v4950_v21  ;;  %4489 = vmatprep.subr.bf16.mxu1 %v5459_v57  ;;  %v5731_v57 = vpack.c.bf16 %v947_v47, %v942_v54  ;;  %v1501_v54 = vld [vmem:[#allocation8 + $0x160] sm:$0xff] }
 0x1a7   : > { %4464 = vmatpush3.bf16.msra.mxu0 %v5707_v23  ;;  %4491 = vmatpush1.bf16.msra.mxu1 %v5491_v10  ;;  %v952_v10 = vld [vmem:[%s5963_s2 + $0x1b0] sm:$0xff] }
 0x1a8   : > { %4465 = vmatprep.subr.bf16.mxu0 %v4950_v21  ;;  %4493 = vmatprep.subr.bf16.mxu1 %v5497_v15  ;;  %v5743_v15 = vpack.c.bf16 %v957_v58, %v952_v10  ;;  %v3763_v10 = vcombine.high %v1490_v44, %v1494_v31 }
 0x1ab   : > { %4467 = vmatpush3.bf16.msra.mxu0 %v5719_v46  ;;  %4495 = vmatpush1.bf16.msra.mxu1 %v5527_v26  ;;  %v962_v26 = vld [vmem:[%s5963_s2 + $0x200] sm:$0xff] }
 0x1ac   : > { %4468 = vmatprep.subr.bf16.mxu0 %v4950_v21  ;;  %4497 = vmatprep.subr.bf16.mxu1 %v5533_v34  ;;  %v5755_v34 = vpack.c.bf16 %v967_v59, %v962_v26  ;;  %v1502_v26 = vld [vmem:[#allocation8 + $0x168] sm:$0xff]  ;;  %v1505_v59 = vld [vmem:[#allocation8 + $0x180] sm:$0xff] }
 0x1af   : > { %4470 = vmatpush3.bf16.msra.mxu0 %v5731_v57  ;;  %4499 = vmatpush1.bf16.msra.mxu1 %v5563_v5 }
 0x1b0   : > { %4471 = vmatprep.subr.bf16.mxu0 %v4950_v21  ;;  %4501 = vmatprep.subr.bf16.mxu1 %v5569_v20 }
 0x1b3   : > { %4473 = vmatpush3.bf16.msra.mxu0 %v5743_v15  ;;  %4503 = vmatpush1.bf16.msra.mxu1 %v5587_v48 }
 0x1b4   : > { %4474 = vmatprep.subr.bf16.mxu0 %v4950_v21  ;;  %v4110_v5 = vpop.f32.mrb[2].mxu1  ;;  %4505 = vmatprep.subr.bf16.mxu1 %v5602_v19 }
 0x1b5   : > { %v4111_v20 = vpop.f32.mrb[3].mxu1 }
 0x1b6   : > { %v4112_v6 = vadd.f32 %v4111_v20, %v4110_v5  ;;  %v3762_v5 = vcombine.low %v1490_v44, %v1494_v31  ;;  %v1554_v44 = vld [vmem:[#allocation8 + $0x308] sm:$0xff] }
 0x1b7   : > { %4476 = vmatpush3.bf16.msra.mxu0 %v5755_v34  ;;  %v4145_v3 = vpop.f32.mrb[4].mxu0  ;;  %4507 = vmatpush1.bf16.msra.mxu1 %v5613_v40  ;;  %v1558_v31 = vld [vmem:[#allocation8 + $0x328] sm:$0xff] }
 0x1b8   : > { %v4146_v48 = vpop.f32.mrb[5].mxu0  ;;  %4477 = vmatprep.subr.bf16.mxu0 %v4950_v21  ;;  %v887_v7 = vpop.f32.mrb[4].mxu1  ;;  %4509 = vmatprep.subr.bf16.mxu1 %v5637_v61 }
 0x1b9   : > { %v4147_v41 = vadd.f32 %v4146_v48, %v4145_v3  ;;  %v4193_v25 = vpop.f32.mrb[5].mxu1  ;;  %v1510_v3 = vld [vmem:[#allocation8 + $0x1a8] sm:$0xff]  ;;  %v1517_v48 = vld [vmem:[#allocation8 + $0x1e0] sm:$0xff] }
 0x1bb   : > { %4479 = vmatpush3.bf16.msra.mxu0 %v5767_v8  ;;  %v818_v19 = vadd.f32 %v4147_v41, %v4112_v6  ;;  %4511 = vmatpush1.bf16.msra.mxu1 %v5649_v9  ;;  %v1506_v6 = vld [vmem:[#allocation8 + $0x188] sm:$0xff] }
 0x1bc   : > { %4513 = vmatprep.subr.bf16.mxu0 %v5395_v35  ;;  %4544 = vmatprep.subr.bf16.mxu1 %v4950_v21  ;;  %v3779_v25 = vcombine.high %v1506_v6, %v1510_v3 }
 0x1bd   : > { %v888_v38 = vadd.f32 %v887_v7, %v818_v19 }
 0x1be   : > { %4227 = vmatmul.mubr.f32.vlgmr.msra.gmra.mrb[8].mxu0 %v5681_v45 }
 0x1bf   : > { %v893_v40 = vmul.f32 %v5676_v27, %v888_v38  ;;  %4515 = vmatpush1.bf16.msra.mxu0 %v5419_v24  ;;  %1325 = vmatprep.mubr.f32.mxu0 %v4948_v1  ;;  %v1457_v24 = vld [vmem:[#allocation8] sm:$0xff]  ;;  %v1514_v38 = vld [vmem:[#allocation8 + $0x1c8] sm:$0xff] }
 0x1c0   : > { %4517 = vmatprep.subr.bf16.mxu0 %v5434_v37  ;;  %v1461_v37 = vld [vmem:[#allocation8 + $0x20] sm:$0xff] }
 0x1c1   : > { %v895_v61 = vsub.f32 %v893_v40, %v894_v39  ;;  %v1481_v27 = vld [vmem:[#allocation8 + $0xc0] sm:$0xff]  ;;  %v1518_v40 = vld [vmem:[#allocation8 + $0x1e8] sm:$0xff] }
 0x1c2   : > { %v3752_v45 = vcombine.low %v1481_v27, %v1485_v29  ;;  %v3753_v14 = vcombine.high %v1481_v27, %v1485_v29  ;;  %v1521_v39 = vld [vmem:[#allocation8 + $0x200] sm:$0xff]  ;;  %v1546_v29 = vld [vmem:[#allocation8 + $0x2c8] sm:$0xff] }
 0x1c3   : > { %v896_v9 = vadd.f32 1e-05, %v895_v61  ;;  %4519 = vmatpush1.bf16.msra.mxu0 %v5457_v55  ;;  %v3729_v55 = vcombine.high %v1457_v24, %v1461_v37  ;;  %v1525_v61 = vld [vmem:[#allocation8 + $0x220] sm:$0xff] }
 0x1c4   : > { %4521 = vmatprep.subr.bf16.mxu0 %v5471_v0  ;;  %v1469_v0 = vld [vmem:[#allocation8 + $0x60] sm:$0xff] }
 0x1c5   : > { %4714 = vrsqrt.f32 %v896_v9  ;;  %v3778_v9 = vcombine.low %v1506_v6, %v1510_v3  ;;  %v1549_v27 = vld [vmem:[#allocation8 + $0x2e0] sm:$0xff]  ;;  %v1570_v6 = vld [vmem:[#allocation8 + $0x388] sm:$0xff] }
 0x1c7   : > { %4523 = vmatpush1.bf16.msra.mxu0 %v5495_v13  ;;  %v3728_v13 = vcombine.low %v1457_v24, %v1461_v37  ;;  %v3787_v24 = vcombine.high %v1514_v38, %v1518_v40  ;;  %v3793_v37 = vcombine.high %v1521_v39, %v1525_v61 }
 0x1c8   : > { %4525 = vmatprep.subr.bf16.mxu0 %v5509_v16 }
 0x1cb   : > { %4527 = vmatpush1.bf16.msra.mxu0 %v5531_v30 }
 0x1cc   : > { %4529 = vmatprep.subr.bf16.mxu0 %v5545_v50  ;;  %v1458_v50 = vld [vmem:[#allocation8 + $0x8] sm:$0xff] }
 0x1cf   : > { %v4715_v35 = vpop.eup %4714  ;;  %4531 = vmatpush1.bf16.msra.mxu0 %v5567_v11  ;;  %v1462_v11 = vld [vmem:[#allocation8 + $0x28] sm:$0xff] }
 0x1d0   : > { %1255 = vmatmul.mubr.f32.vlgmr.msra.gmra.mrb[8].mxu1 %v4715_v35  ;;  %4533 = vmatprep.subr.bf16.mxu0 %v5578_v28  ;;  %v3731_v28 = vcombine.high %v1458_v50, %v1462_v11 }
 0x1d1   : > { %4546 = vmatpush3.bf16.msra.mxu1 %v5678_v42  ;;  %4261 = vmatprep.mubr.msk.f32.mxu1 %vm4949_vm2, %v4948_v1  ;;  %v1465_v1 = vld [vmem:[#allocation8 + $0x40] sm:$0xff]  ;;  %v1482_v42 = vld [vmem:[#allocation8 + $0xc8] sm:$0xff] }
 0x1d2   : > { %4547 = vmatprep.subr.bf16.mxu1 %v4950_v21  ;;  %v3737_v16 = vcombine.high %v1465_v1, %v1469_v0  ;;  %v3736_v30 = vcombine.low %v1465_v1, %v1469_v0  ;;  %v3755_v36 = vcombine.high %v1482_v42, %v1486_v18  ;;  %v3754_v47 = vcombine.low %v1482_v42, %v1486_v18  ;;  %v1526_v1 = vld [vmem:[#allocation8 + $0x228] sm:$0xff]  ;;  %v1529_v0 = vld [vmem:[#allocation8 + $0x240] sm:$0xff] }
 0x1d3   : > { %4535 = vmatpush1.bf16.msra.mxu0 %v5591_v60  ;;  %v1466_v60 = vld [vmem:[#allocation8 + $0x48] sm:$0xff] }
 0x1d4   : > { %4537 = vmatprep.subr.bf16.mxu0 %v5625_v53  ;;  %v1470_v53 = vld [vmem:[#allocation8 + $0x68] sm:$0xff] }
 0x1d5   : > { %4549 = vmatpush3.bf16.msra.mxu1 %v5692_v32  ;;  %v1489_v32 = vld [vmem:[#allocation8 + $0x100] sm:$0xff]  ;;  %v1550_v18 = vld [vmem:[#allocation8 + $0x2e8] sm:$0xff] }
 0x1d6   : > { %4550 = vmatprep.subr.bf16.mxu1 %v4950_v21 }
 0x1d7   : > { %4539 = vmatpush1.bf16.msra.mxu0 %v5627_v49  ;;  %v3730_v49 = vcombine.low %v1458_v50, %v1462_v11 }
 0x1d8   : > { %4541 = vmatprep.subr.bf16.mxu0 %v5661_v12  ;;  %v3739_v12 = vcombine.high %v1466_v60, %v1470_v53 }
 0x1d9   : > { %4552 = vmatpush3.bf16.msra.mxu1 %v5707_v23  ;;  %v3761_v23 = vcombine.high %v1489_v32, %v1493_v33 }
 0x1da   : > { %4553 = vmatprep.subr.bf16.mxu1 %v4950_v21 }
 0x1db   : > { %4543 = vmatpush1.bf16.msra.mxu0 %v5663_v17  ;;  %v3738_v17 = vcombine.low %v1466_v60, %v1470_v53  ;;  %v1534_v60 = vld [vmem:[#allocation8 + $0x268] sm:$0xff] }
 0x1dc   : > { %3087 = vmatprep.subr.bf16.mxu0 %v3729_v55  ;;  %v1522_v55 = vld [vmem:[#allocation8 + $0x208] sm:$0xff] }
 0x1dd   : > { %4555 = vmatpush3.bf16.msra.mxu1 %v5719_v46  ;;  %v1497_v46 = vld [vmem:[#allocation8 + $0x140] sm:$0xff]  ;;  %v3795_v50 = vcombine.high %v1522_v55, %v1526_v1  ;;  %v3794_v53 = vcombine.low %v1522_v55, %v1526_v1  ;;  %v1586_v55 = vld [vmem:[#allocation8 + $0x408] sm:$0xff] }
 0x1de   : > { %1326 = vmatmul.mubr.f32.vlgmr.msra.gmra.mrb[10].mxu0 %v4715_v35  ;;  %4556 = vmatprep.subr.bf16.mxu1 %v4950_v21  ;;  %v3769_v58 = vcombine.high %v1497_v46, %v1501_v54  ;;  %v3768_v62 = vcombine.low %v1497_v46, %v1501_v54  ;;  %v1561_v46 = vld [vmem:[#allocation8 + $0x340] sm:$0xff] }
 0x1df   : > { %3088 = vmatpush1.bf16.msra.mxu0 %v3728_v13  ;;  %v1533_v13 = vld [vmem:[#allocation8 + $0x260] sm:$0xff] }
 0x1e0   : > { %3089 = vmatprep.subr.bf16.mxu0 %v3737_v16  ;;  %v3786_v16 = vcombine.low %v1514_v38, %v1518_v40  ;;  %v3801_v11 = vcombine.high %v1529_v0, %v1533_v13  ;;  %v1565_v54 = vld [vmem:[#allocation8 + $0x360] sm:$0xff]  ;;  %v1578_v38 = vld [vmem:[#allocation8 + $0x3c8] sm:$0xff] }
 0x1e1   : > { %4558 = vmatpush3.bf16.msra.mxu1 %v5731_v57  ;;  %v3760_v57 = vcombine.low %v1489_v32, %v1493_v33  ;;  %v1553_v32 = vld [vmem:[#allocation8 + $0x300] sm:$0xff] }
 0x1e2   : > { %4559 = vmatprep.subr.bf16.mxu1 %v4950_v21  ;;  %v1557_v33 = vld [vmem:[#allocation8 + $0x320] sm:$0xff] }
 0x1e3   : > { %3090 = vmatpush1.bf16.msra.mxu0 %v3736_v30  ;;  %v3792_v30 = vcombine.low %v1521_v39, %v1525_v61  ;;  %v1582_v39 = vld [vmem:[#allocation8 + $0x3e8] sm:$0xff] }
 0x1e4   : > { %3091 = vmatprep.subr.bf16.mxu0 %v3745_v56  ;;  %v3809_v56 = vcombine.high %v1537_v43, %v1541_v51 }
 0x1e5   : > { %4561 = vmatpush3.bf16.msra.mxu1 %v5743_v15  ;;  %v1498_v15 = vld [vmem:[#allocation8 + $0x148] sm:$0xff] }
 0x1e6   : > { %4562 = vmatprep.subr.bf16.mxu1 %v4950_v21  ;;  %v3771_v2 = vcombine.high %v1498_v15, %v1502_v26  ;;  %v3770_v7 = vcombine.low %v1498_v15, %v1502_v26  ;;  %v1562_v15 = vld [vmem:[#allocation8 + $0x348] sm:$0xff] }
 0x1e7   : > { %3092 = vmatpush1.bf16.msra.mxu0 %v3744_v4  ;;  %v3808_v4 = vcombine.low %v1537_v43, %v1541_v51  ;;  %v1566_v26 = vld [vmem:[#allocation8 + $0x368] sm:$0xff] }
 0x1e8   : > { %3093 = vmatprep.subr.bf16.mxu0 %v3753_v14 }
 0x1e9   : > { %4564 = vmatpush3.bf16.msra.mxu1 %v5755_v34  ;;  %v1509_v34 = vld [vmem:[#allocation8 + $0x1a0] sm:$0xff] }
 0x1ea   : > { %4565 = vmatprep.subr.bf16.mxu1 %v4950_v21  ;;  %v3746_v21 = vcombine.low %v1474_v52, %v1478_v63  ;;  %v3777_v20 = vcombine.high %v1505_v59, %v1509_v34  ;;  %v3776_v41 = vcombine.low %v1505_v59, %v1509_v34  ;;  %v1538_v52 = vld [vmem:[#allocation8 + $0x288] sm:$0xff]  ;;  %v3826_v59 = vcombine.low %v1554_v44, %v1558_v31 }
 0x1eb   : > { %3094 = vmatpush1.bf16.msra.mxu0 %v3752_v45  ;;  %v1542_v63 = vld [vmem:[#allocation8 + $0x2a8] sm:$0xff]  ;;  %v3832_v34 = vcombine.low %v1561_v46, %v1565_v54 }
 0x1ec   : > { %3095 = vmatprep.subr.bf16.mxu0 %v3761_v23  ;;  %v3810_v42 = vcombine.low %v1538_v52, %v1542_v63  ;;  %v3825_v23 = vcombine.high %v1553_v32, %v1557_v33 }
 0x1ed   : > { %4567 = vmatpush3.bf16.msra.mxu1 %v5767_v8  ;;  %v1513_v8 = vld [vmem:[#allocation8 + $0x1c0] sm:$0xff] }
 0x1ee   : > { %3210 = vmatprep.subr.bf16.mxu1 %v3731_v28  ;;  %v3785_v19 = vcombine.high %v1513_v8, %v1517_v48  ;;  %v1530_v28 = vld [vmem:[#allocation8 + $0x248] sm:$0xff] }
 0x1ef   : > { %3096 = vmatpush1.bf16.msra.mxu0 %v3760_v57  ;;  %v3824_v57 = vcombine.low %v1553_v32, %v1557_v33  ;;  %v1597_v32 = vld [vmem:[#allocation8 + $0x460] sm:$0xff]  ;;  %v1594_v33 = vld [vmem:[#allocation8 + $0x448] sm:$0xff] }
 0x1f0   : > { %4262 = vmatmul.mubr.f32.vlgmr.msra.gmra.mrb[10].mxu1 %v4715_v35  ;;  %3097 = vmatprep.subr.bf16.mxu0 %v3769_v58  ;;  %v3784_v35 = vcombine.low %v1513_v8, %v1517_v48  ;;  %v3833_v58 = vcombine.high %v1561_v46, %v1565_v54  ;;  %v1574_v8 = vld [vmem:[#allocation8 + $0x3a8] sm:$0xff]  ;;  %v1601_v54 = vld [vmem:[#allocation8 + $0x480] sm:$0xff] }
 0x1f1   : > { %3211 = vmatpush1.bf16.msra.mxu1 %v3730_v49  ;;  %v3800_v49 = vcombine.low %v1529_v0, %v1533_v13  ;;  %v1590_v0 = vld [vmem:[#allocation8 + $0x428] sm:$0xff] }
 0x1f2   : > { %3212 = vmatprep.subr.bf16.mxu1 %v3739_v12  ;;  %v3803_v12 = vcombine.high %v1530_v28, %v1534_v60 }
 0x1f3   : > { %3098 = vmatpush1.bf16.msra.mxu0 %v3768_v62  ;;  %v3834_v62 = vcombine.low %v1562_v15, %v1566_v26 }
 0x1f4   : > { %3099 = vmatprep.subr.bf16.mxu0 %v3777_v20  ;;  %v1573_v20 = vld [vmem:[#allocation8 + $0x3a0] sm:$0xff] }
 0x1f5   : > { %3213 = vmatpush1.bf16.msra.mxu1 %v3738_v17  ;;  %v3802_v17 = vcombine.low %v1530_v28, %v1534_v60 }
 0x1f6   : > { %3214 = vmatprep.subr.bf16.mxu1 %v3747_v22  ;;  %v3811_v22 = vcombine.high %v1538_v52, %v1542_v63  ;;  %v4716_v63 = vld [vmem:[%s5198_s8] sm:$0xff] }
 0x1f7   : > { %3100 = vmatpush1.bf16.msra.mxu0 %v3776_v41  ;;  %v3842_v41 = vcombine.low %v1570_v6, %v1574_v8 }
 0x1f8   : > { %3101 = vmatprep.subr.bf16.mxu0 %v3785_v19  ;;  %v1581_v19 = vld [vmem:[#allocation8 + $0x3e0] sm:$0xff] }
 0x1f9   : > { %3215 = vmatpush1.bf16.msra.mxu1 %v3746_v21  ;;  %v1545_v21 = vld [vmem:[#allocation8 + $0x2c0] sm:$0xff] }
 0x1fa   : > { %3216 = vmatprep.subr.bf16.mxu1 %v3755_v36  ;;  %v3816_v45 = vcombine.low %v1545_v21, %v1549_v27  ;;  %v3817_v14 = vcombine.high %v1545_v21, %v1549_v27  ;;  %v3819_v36 = vcombine.high %v1546_v29, %v1550_v18  ;;  %v4717_v27 = vld [vmem:[%s5198_s8 + $0x8] sm:$0xff] }
 0x1fb   : > { %3102 = vmatpush1.bf16.msra.mxu0 %v3784_v35  ;;  %v3850_v35 = vcombine.low %v1578_v38, %v1582_v39 }
 0x1fc   : > { %3103 = vmatprep.subr.bf16.mxu0 %v3793_v37  ;;  %v1589_v37 = vld [vmem:[#allocation8 + $0x420] sm:$0xff] }
 0x1fd   : > { %3217 = vmatpush1.bf16.msra.mxu1 %v3754_v47  ;;  %v3818_v47 = vcombine.low %v1546_v29, %v1550_v18 }
 0x1fe   : > { %3218 = vmatprep.subr.bf16.mxu1 %v3763_v10  ;;  %v3827_v10 = vcombine.high %v1554_v44, %v1558_v31 }
 0x1ff   : > { %3104 = vmatpush1.bf16.msra.mxu0 %v3792_v30  ;;  %v3859_v30 = vcombine.high %v1586_v55, %v1590_v0 }
 0x200   : > { %3105 = vmatprep.subr.bf16.mxu0 %v3801_v11 }
 0x201   : > { %3219 = vmatpush1.bf16.msra.mxu1 %v3762_v5  ;;  %v3835_v5 = vcombine.high %v1562_v15, %v1566_v26 }
 0x202   : > { %3220 = vmatprep.subr.bf16.mxu1 %v3771_v2  ;;  %v1569_v2 = vld [vmem:[#allocation8 + $0x380] sm:$0xff] }
 0x203   : > { %3106 = vmatpush1.bf16.msra.mxu0 %v3800_v49  ;;  %v3841_v3 = vcombine.high %v1569_v2, %v1573_v20  ;;  %v3840_v48 = vcombine.low %v1569_v2, %v1573_v20  ;;  %v1610_v20 = vld [vmem:[#allocation8 + $0x4c8] sm:$0xff] }
 0x204   : > { %3107 = vmatprep.subr.bf16.mxu0 %v3809_v56 }
 0x205   : > { %3221 = vmatpush1.bf16.msra.mxu1 %v3770_v7  ;;  %v3843_v7 = vcombine.high %v1570_v6, %v1574_v8  ;;  %v1614_v6 = vld [vmem:[#allocation8 + $0x4e8] sm:$0xff] }
 0x206   : > { %3222 = vmatprep.subr.bf16.mxu1 %v3779_v25  ;;  %v1577_v25 = vld [vmem:[#allocation8 + $0x3c0] sm:$0xff] }
 0x207   : > { %3108 = vmatpush1.bf16.msra.mxu0 %v3808_v4  ;;  %v3849_v40 = vcombine.high %v1577_v25, %v1581_v19  ;;  %v3848_v61 = vcombine.low %v1577_v25, %v1581_v19 }
 0x208   : > { %3109 = vmatprep.subr.bf16.mxu0 %v3817_v14  ;;  %v1593_v14 = vld [vmem:[#allocation8 + $0x440] sm:$0xff] }
 0x209   : > { %3223 = vmatpush1.bf16.msra.mxu1 %v3778_v9  ;;  %v3851_v9 = vcombine.high %v1578_v38, %v1582_v39  ;;  %v3865_v31 = vcombine.high %v1593_v14, %v1597_v32  ;;  %v4719_v39 = vld [vmem:[%s5198_s8 + $0x18] sm:$0xff] }
 0x20a   : > { %3224 = vmatprep.subr.bf16.mxu1 %v3787_v24  ;;  %v1585_v24 = vld [vmem:[#allocation8 + $0x400] sm:$0xff] }
 0x20b   : > { %3110 = vmatpush1.bf16.msra.mxu0 %v3816_v45  ;;  %v3857_v1 = vcombine.high %v1585_v24, %v1589_v37  ;;  %v3856_v13 = vcombine.low %v1585_v24, %v1589_v37  ;;  %v1621_v37 = vld [vmem:[#allocation8 + $0x520] sm:$0xff] }
 0x20c   : > { %3111 = vmatprep.subr.bf16.mxu0 %v3825_v23 }
 0x20d   : > { %3225 = vmatpush1.bf16.msra.mxu1 %v3786_v16  ;;  %v3858_v16 = vcombine.low %v1586_v55, %v1590_v0  ;;  %v1618_v55 = vld [vmem:[#allocation8 + $0x508] sm:$0xff] }
 0x20e   : > { %3226 = vmatprep.subr.bf16.mxu1 %v3795_v50 }
 0x20f   : > { %3112 = vmatpush1.bf16.msra.mxu0 %v3824_v57  ;;  %v1602_v57 = vld [vmem:[#allocation8 + $0x488] sm:$0xff] }
 0x210   : > { %3113 = vmatprep.subr.bf16.mxu0 %v3833_v58  ;;  %v3864_v58 = vcombine.low %v1593_v14, %v1597_v32  ;;  %v1645_v32 = vld [vmem:[#allocation8 + $0x5e0] sm:$0xff] }
 0x211   : > { %3227 = vmatpush1.bf16.msra.mxu1 %v3794_v53 }
 0x212   : > { %3228 = vmatprep.subr.bf16.mxu1 %v3803_v12  ;;  %v1402_v12 = vlaneseq }
 0x213   : > { %3114 = vmatpush1.bf16.msra.mxu0 %v3832_v34 }
 0x214   : > { %3115 = vmatprep.subr.bf16.mxu0 %v3841_v3 }
 0x215   : > { %3229 = vmatpush1.bf16.msra.mxu1 %v3802_v17  ;;  %v5817_v17 = vshrl.u32 %v1402_v12, 7  ;;  %v1630_v12 = vld [vmem:[#allocation8 + $0x568] sm:$0xff] }
 0x216   : > { %3230 = vmatprep.subr.bf16.mxu1 %v3811_v22 }
 0x217   : > { %3116 = vmatpush1.bf16.msra.mxu0 %v3840_v48  ;;  %v5820_v43 = vsub.s32 0, %v5817_v17 }
 0x218   : > { %3117 = vmatprep.subr.bf16.mxu0 %v3849_v40  ;;  %v3883_v40 = vcombine.high %v1610_v20, %v1614_v6 }
 0x219   : > { %3231 = vmatpush1.bf16.msra.mxu1 %v3810_v42 }
 0x21a   : > { %3232 = vmatprep.subr.bf16.mxu1 %v3819_v36  ;;  %v1598_v36 = vld [vmem:[#allocation8 + $0x468] sm:$0xff] }
 0x21b   : > { %3118 = vmatpush1.bf16.msra.mxu0 %v3848_v61  ;;  %v3867_v46 = vcombine.high %v1594_v33, %v1598_v36  ;;  %v3866_v15 = vcombine.low %v1594_v33, %v1598_v36  ;;  %v1642_v36 = vld [vmem:[#allocation8 + $0x5c8] sm:$0xff] }
 0x21c   : > { %3128 = vmatprep.subr.bf16.mxu0 %v3857_v1  ;;  %v1622_v1 = vld [vmem:[#allocation8 + $0x528] sm:$0xff] }
 0x21d   : > { %3233 = vmatpush1.bf16.msra.mxu1 %v3818_v47  ;;  %v1605_v47 = vld [vmem:[#allocation8 + $0x4a0] sm:$0xff] }
 0x21e   : > { %3234 = vmatprep.subr.bf16.mxu1 %v3827_v10  ;;  %v1606_v10 = vld [vmem:[#allocation8 + $0x4a8] sm:$0xff]  ;;  %v3872_v8 = vcombine.low %v1601_v54, %v1605_v47 }
 0x21f   : > { %v3875_v34 = vcombine.high %v1602_v57, %v1606_v10  ;;  %v3874_v48 = vcombine.low %v1602_v57, %v1606_v10 }
 0x221   : > { %3235 = vmatpush1.bf16.msra.mxu1 %v3826_v59  ;;  %v3873_v59 = vcombine.high %v1601_v54, %v1605_v47 }
 0x222   : > { %3236 = vmatprep.subr.bf16.mxu1 %v3835_v5  ;;  %v1609_v5 = vld [vmem:[#allocation8 + $0x4c0] sm:$0xff] }
 0x225   : > { %3237 = vmatpush1.bf16.msra.mxu1 %v3834_v62  ;;  %v1613_v62 = vld [vmem:[#allocation8 + $0x4e0] sm:$0xff] }
 0x226   : > { %3238 = vmatprep.subr.bf16.mxu1 %v3843_v7  ;;  %v3881_v7 = vcombine.high %v1609_v5, %v1613_v62 }
 0x229   : > { %3239 = vmatpush1.bf16.msra.mxu1 %v3842_v41  ;;  %v4718_v41 = vld [vmem:[%s5198_s8 + $0x10] sm:$0xff] }
 0x22a   : > { %3240 = vmatprep.subr.bf16.mxu1 %v3851_v9 }
 0x22d   : > { %3241 = vmatpush1.bf16.msra.mxu1 %v3850_v35  ;;  %v1617_v35 = vld [vmem:[#allocation8 + $0x500] sm:$0xff] }
 0x22e   : > { %3251 = vmatprep.subr.bf16.mxu1 %v3859_v30 }
 0x271   : > { %v1044_v50 = vpop.f32.mrb[6].mxu0  ;;  %v1115_v11 = vpop.f32.mrb[6].mxu1 }
 0x272   : > { %v1046_v28 = vpop.f32.mrb[7].mxu0  ;;  %v5813_v60 = vpop.f32.mrb[7].mxu1  ;;  %v1405_v51 = vrot.slane %v1044_v50, %v5820_v43  ;;  %v1413_v26 = vrot.slane %v1115_v11, %v5820_v43  ;;  %v3889_v50 = vcombine.high %v1617_v35, %v1621_v37  ;;  %v3891_v11 = vcombine.high %v1618_v55, %v1622_v1 }
 0x273   : > { %v1409_v52 = vrot.slane %v1046_v28, %v5820_v43  ;;  %v1417_v2 = vrot.slane %v5813_v60, %v5820_v43  ;;  %v1625_v28 = vld [vmem:[#allocation8 + $0x540] sm:$0xff] }
 0x274   : > { %v1422_v4 = vsub.f32 %v4716_v63, %v1405_v51  ;;  %v1424_v25 = vsub.f32 %v4718_v41, %v1413_v26  ;;  %v1629_v60 = vld [vmem:[#allocation8 + $0x560] sm:$0xff]  ;;  %v3888_v51 = vcombine.low %v1617_v35, %v1621_v37  ;;  %v1658_v41 = vld [vmem:[#allocation8 + $0x648] sm:$0xff] }
 0x275   : > { %v1423_v29 = vsub.f32 %v4717_v27, %v1409_v52  ;;  %v1425_v61 = vsub.f32 %v4719_v39, %v1417_v2  ;;  %v3890_v52 = vcombine.low %v1618_v55, %v1622_v1  ;;  %v1638_v27 = vld [vmem:[#allocation8 + $0x5a8] sm:$0xff] }
 0x276   : > { %v4720_v26 = vld [vmem:[%s5198_s8 + $0x20] sm:$0xff]  ;;  %s3723_s8 = sshll.u32 %s5194_s15, 6 }
 0x277   : > { %v1666_v35 = vld [vmem:[#allocation8 + $0x688] sm:$0xff]  ;;  %s5898_s12 = scalar_lea.vmem [#allocation11], %s3723_s8 }
 0x278   : > { %v1670_v37 = vld [vmem:[#allocation8 + $0x6a8] sm:$0xff]  ;;  %s3602_s10 = sshll.u32 %s5898_s12, 4  ;;  %s5916_s10 = int_to_ptr.vmem [resolvable:$true] %s3602_s10 }
 0x279   : > { %s4863_s14 = scalar_lea.vmem %s5916_s10, 1024  ;;  %p4870_p10 = scmp.lt.s32.totalorder %s5916_s10, %s4868_s25 }
 0x27a   : > { %p4864_p0 = scmp.ne.s32.totalorder %s5916_s10, %s4863_s14  ;;  %p4871_p11 = scmp.lt.s32.totalorder %s4869_s28, %s4863_s14 }
 0x27c   : > { %p4865_p2 = pnand %p4864_p0, %p5984_p6  ;;  %p4872_p3 = por %p4871_p11, %p4870_p10 }
 0x27e   : > { %p4866_p5 = pneg %p4865_p2 }
 0x280   : > { %p4873_p12 = pnand %p4872_p3, %p4866_p5 }
 0x291   : > { %v5815_v53 = vpop.f32.mrb[8].mxu0 }
 0x292   : > { %v4228_v49 = vpop.f32.mrb[9].mxu0  ;;  %v1421_v33 = vrot.slane %v5815_v53, %v5820_v43  ;;  %v1654_v53 = vld [vmem:[#allocation8 + $0x628] sm:$0xff] }
 0x293   : > { %v1626_v49 = vld [vmem:[#allocation8 + $0x548] sm:$0xff] }
 0x294   : > { %v3899_v63 = vcombine.high %v1626_v49, %v1630_v12 }
 0x2a3   : > { %v1256_v56 = vpop.f32.mrb[8].mxu1 }
 0x2a4   : > { %v1430_v22 = vrot.slane %v1256_v56, %v5820_v43  ;;  %v1258_v21 = vpop.f32.mrb[9].mxu1  ;;  %v3897_v56 = vcombine.high %v1625_v28, %v1629_v60 }
 0x2a5   : > { %v1434_v42 = vrot.slane %v1258_v21, %v5820_v43  ;;  %v1634_v21 = vld [vmem:[#allocation8 + $0x588] sm:$0xff] }
 0x2a6   : > { %v1447_v45 = vmul.f32 %v1430_v22, %v1422_v4  ;;  %v1633_v4 = vld [vmem:[#allocation8 + $0x580] sm:$0xff]  ;;  %v3907_v14 = vcombine.high %v1634_v21, %v1638_v27  ;;  %v3906_v54 = vcombine.low %v1634_v21, %v1638_v27 }
 0x2a7   : > { %v1448_v18 = vmul.f32 %v1434_v42, %v1423_v29  ;;  %v1637_v22 = vld [vmem:[#allocation8 + $0x5a0] sm:$0xff]  ;;  %v3896_v29 = vcombine.low %v1625_v28, %v1629_v60  ;;  %v3898_v42 = vcombine.low %v1626_v49, %v1630_v12  ;;  %v1678_v28 = vld [vmem:[#allocation8 + $0x6e8] sm:$0xff]  ;;  %v3938_v49 = vcombine.low %v1666_v35, %v1670_v37 }
 0x2a8   : > { %v5830_v44 = vpack.c.bf16 %v1447_v45, %v1447_v45  ;;  %v3905_v45 = vcombine.high %v1633_v4, %v1637_v22 }
 0x2a9   : > { %v5828_v23 = vpack.c.bf16 %v1448_v18, %v1448_v18  ;;  %v1641_v18 = vld [vmem:[#allocation8 + $0x5c0] sm:$0xff] }
 0x2aa   : > { %v3913_v47 = vcombine.high %v1641_v18, %v1645_v32  ;;  %v3912_v2 = vcombine.low %v1641_v18, %v1645_v32  ;;  %v1694_v18 = vld [vmem:[#allocation8 + $0x768] sm:$0xff] }
 0x2ab   : > { %3119 = vmatprep.mubr.bf16.mxu0 %v5828_v23  ;;  %3242 = vmatprep.mubr.bf16.mxu1 %v5828_v23 }
 0x2ac   : > { %3120 = vmatmul.mubr.bf16.vlgmr.msra.gmra.mrb[12].mxu0 %v5830_v44  ;;  %3243 = vmatmul.mubr.bf16.vlgmr.msra.gmra.mrb[12].mxu1 %v5830_v44 }
 0x2ad   : > { %3129 = vmatpush1.bf16.msra.mxu0 %v3856_v13  ;;  %3252 = vmatpush1.bf16.msra.mxu1 %v3858_v16  ;;  %v3880_v13 = vcombine.low %v1609_v5, %v1613_v62  ;;  %v3882_v16 = vcombine.low %v1610_v20, %v1614_v6  ;;  %v1650_v62 = vld [vmem:[#allocation8 + $0x608] sm:$0xff] }
 0x2ae   : > { %3130 = vmatprep.subr.bf16.mxu0 %v3865_v31  ;;  %3253 = vmatprep.subr.bf16.mxu1 %v3867_v46  ;;  %v1646_v31 = vld [vmem:[#allocation8 + $0x5e8] sm:$0xff]  ;;  %v3904_v46 = vcombine.low %v1633_v4, %v1637_v22 }
 0x2af   : > { %v3915_v10 = vcombine.high %v1642_v36, %v1646_v31  ;;  %v3914_v6 = vcombine.low %v1642_v36, %v1646_v31  ;;  %v1686_v4 = vld [vmem:[#allocation8 + $0x728] sm:$0xff] }
 0x2b1   : > { %v1327_v3 = vpop.f32.mrb[10].mxu0  ;;  %3131 = vmatpush1.bf16.msra.mxu0 %v3864_v58  ;;  %3254 = vmatpush1.bf16.msra.mxu1 %v3866_v15  ;;  %v1649_v58 = vld [vmem:[#allocation8 + $0x600] sm:$0xff] }
 0x2b2   : > { %v1438_v19 = vrot.slane %v1327_v3, %v5820_v43  ;;  %v1329_v38 = vpop.f32.mrb[11].mxu0  ;;  %3132 = vmatprep.subr.bf16.mxu0 %v3873_v59  ;;  %3255 = vmatprep.subr.bf16.mxu1 %v3875_v34  ;;  %v1653_v15 = vld [vmem:[#allocation8 + $0x620] sm:$0xff]  ;;  %v1426_v59 = vsub.f32 %v4720_v26, %v1421_v33 }
 0x2b3   : > { %v1442_v9 = vrot.slane %v1329_v38, %v5820_v43  ;;  %v3921_v3 = vcombine.high %v1649_v58, %v1653_v15  ;;  %v3922_v38 = vcombine.low %v1650_v62, %v1654_v53 }
 0x2b4   : > { %v5843_v24 = vmul.f32 %v1438_v19, %v1424_v25  ;;  %v1662_v25 = vld [vmem:[#allocation8 + $0x668] sm:$0xff]  ;;  %v3920_v19 = vcombine.low %v1649_v58, %v1653_v15 }
 0x2b5   : > { %v1450_v0 = vmul.f32 %v1442_v9, %v1425_v61  ;;  %3133 = vmatpush1.bf16.msra.mxu0 %v3872_v8  ;;  %3256 = vmatpush1.bf16.msra.mxu1 %v3874_v48  ;;  %v3923_v8 = vcombine.high %v1650_v62, %v1654_v53  ;;  %v1657_v48 = vld [vmem:[#allocation8 + $0x640] sm:$0xff]  ;;  %v3931_v39 = vcombine.high %v1658_v41, %v1662_v25  ;;  %v1710_v62 = vld [vmem:[#allocation8 + $0x7e8] sm:$0xff] }
 0x2b6   : > { %3134 = vmatprep.subr.bf16.mxu0 %v3881_v7  ;;  %3257 = vmatprep.subr.bf16.mxu1 %v3883_v40  ;;  %v1661_v7 = vld [vmem:[#allocation8 + $0x660] sm:$0xff]  ;;  %v3930_v1 = vcombine.low %v1658_v41, %v1662_v25 }
 0x2b7   : > { %v5845_v30 = vpack.c.bf16 %v1450_v0, %v1450_v0  ;;  %v3929_v40 = vcombine.high %v1657_v48, %v1661_v7  ;;  %v1665_v61 = vld [vmem:[#allocation8 + $0x680] sm:$0xff]  ;;  %v3928_v55 = vcombine.low %v1657_v48, %v1661_v7  ;;  %v1714_v48 = vld [vmem:[#allocation8 + $0x808] sm:$0x11] }
 0x2b8   : > { %v1669_v9 = vld [vmem:[#allocation8 + $0x6a0] sm:$0xff] }
 0x2b9   : > { %3135 = vmatpush1.bf16.msra.mxu0 %v3880_v13  ;;  %3160 = vmatprep.mubr.bf16.mxu0 %v5845_v30  ;;  %v3937_v0 = vcombine.high %v1665_v61, %v1669_v9  ;;  %v3939_v13 = vcombine.high %v1666_v35, %v1670_v37  ;;  %v3936_v60 = vcombine.low %v1665_v61, %v1669_v9  ;;  %v1463_v61 = vld [vmem:[#allocation8 + $0x30] sm:$0xff]  ;;  %v1460_v9 = vld [vmem:[#allocation8 + $0x18] sm:$0xff] }
 0x2ba   : > { %3258 = vmatpush1.bf16.msra.mxu1 %v3882_v16  ;;  %3283 = vmatprep.mubr.bf16.mxu1 %v5845_v30  ;;  %v1673_v16 = vld [vmem:[#allocation8 + $0x6c0] sm:$0xff]  ;;  %v1464_v35 = vld [vmem:[#allocation8 + $0x38] sm:$0xff]  ;;  %v5857_v37 = vpack.c.bf16 %v5843_v24, %v5843_v24  ;;  %v1467_v24 = vld [vmem:[#allocation8 + $0x50] sm:$0xff] }
 0x2bb   : > { %3136 = vmatprep.subr.bf16.mxu0 %v3889_v50  ;;  %3259 = vmatprep.subr.bf16.mxu1 %v3891_v11  ;;  %v1677_v50 = vld [vmem:[#allocation8 + $0x6e0] sm:$0xff]  ;;  %v1674_v11 = vld [vmem:[#allocation8 + $0x6c8] sm:$0xff] }
 0x2bc   : > { %v3945_v12 = vcombine.high %v1673_v16, %v1677_v50  ;;  %v3944_v22 = vcombine.low %v1673_v16, %v1677_v50  ;;  %v3946_v21 = vcombine.low %v1674_v11, %v1678_v28  ;;  %v4951_v16 = vmov 0   ;;  %v1471_v50 = vld [vmem:[#allocation8 + $0x70] sm:$0xff] }
 0x2bd   : > { %3137 = vmatpush1.bf16.msra.mxu0 %v3888_v51  ;;  %v3947_v51 = vcombine.high %v1674_v11, %v1678_v28  ;;  %v1468_v28 = vld [vmem:[#allocation8 + $0x58] sm:$0xff] }
 0x2be   : > { %3260 = vmatpush1.bf16.msra.mxu1 %v3890_v52  ;;  %3138 = vmatprep.subr.bf16.mxu0 %v3897_v56  ;;  %v1681_v52 = vld [vmem:[#allocation8 + $0x700] sm:$0xff] }
 0x2bf   : > { %3261 = vmatprep.subr.bf16.mxu1 %v3899_v63  ;;  %v1685_v56 = vld [vmem:[#allocation8 + $0x720] sm:$0xff]  ;;  %v1682_v63 = vld [vmem:[#allocation8 + $0x708] sm:$0xff] }
 0x2c0   : > { %v3953_v27 = vcombine.high %v1681_v52, %v1685_v56  ;;  %v3952_v32 = vcombine.low %v1681_v52, %v1685_v56  ;;  %v3954_v33 = vcombine.low %v1682_v63, %v1686_v4  ;;  %v1475_v52 = vld [vmem:[#allocation8 + $0x90] sm:$0xff] }
 0x2c1   : > { %3139 = vmatpush1.bf16.msra.mxu0 %v3896_v29  ;;  %v3955_v29 = vcombine.high %v1682_v63, %v1686_v4  ;;  %v1479_v56 = vld [vmem:[#allocation8 + $0xb0] sm:$0xff]  ;;  %v1476_v4 = vld [vmem:[#allocation8 + $0x98] sm:$0xff] }
 0x2c2   : > { %3262 = vmatpush1.bf16.msra.mxu1 %v3898_v42  ;;  %3140 = vmatprep.subr.bf16.mxu0 %v3905_v45  ;;  %v1689_v42 = vld [vmem:[#allocation8 + $0x740] sm:$0xff] }
 0x2c3   : > { %v1398_v57 = vpop.f32.mrb[10].mxu1  ;;  %3263 = vmatprep.subr.bf16.mxu1 %v3907_v14  ;;  %v1693_v45 = vld [vmem:[#allocation8 + $0x760] sm:$0xff]  ;;  %v1690_v14 = vld [vmem:[#allocation8 + $0x748] sm:$0xff] }
 0x2c4   : > { %v1446_v34 = vrot.slane %v1398_v57, %v5820_v43  ;;  %v4263_v5 = vpop.f32.mrb[11].mxu1  ;;  %v3961_v36 = vcombine.high %v1689_v42, %v1693_v45  ;;  %v3963_v31 = vcombine.high %v1690_v14, %v1694_v18  ;;  %v1702_v57 = vld [vmem:[#allocation8 + $0x7a8] sm:$0xff]  ;;  %v3962_v58 = vcombine.low %v1690_v14, %v1694_v18  ;;  %v1484_v14 = vld [vmem:[#allocation8 + $0xd8] sm:$0xff] }
 0x2c5   : > { %3141 = vmatpush1.bf16.msra.mxu0 %v3904_v46  ;;  %v1697_v46 = vld [vmem:[#allocation8 + $0x780] sm:$0xff]  ;;  %v1706_v5 = vld [vmem:[#allocation8 + $0x7c8] sm:$0xff]  ;;  %v1488_v18 = vld [vmem:[#allocation8 + $0xf8] sm:$0xff] }
 0x2c6   : > { %v5853_v20 = vmul.f32 %v1446_v34, %v1426_v59  ;;  %3264 = vmatpush1.bf16.msra.mxu1 %v3906_v54  ;;  %3142 = vmatprep.subr.bf16.mxu0 %v3913_v47  ;;  %v1701_v54 = vld [vmem:[#allocation8 + $0x7a0] sm:$0xff]  ;;  %v1698_v47 = vld [vmem:[#allocation8 + $0x788] sm:$0xff]  ;;  %v3978_v41 = vcombine.low %v1706_v5, %v1710_v62 }
 0x2c7   : > { %3265 = vmatprep.subr.bf16.mxu1 %v3915_v10  ;;  %v3960_v10 = vcombine.low %v1689_v42, %v1693_v45  ;;  %v3969_v15 = vcombine.high %v1697_v46, %v1701_v54  ;;  %v3971_v26 = vcombine.high %v1698_v47, %v1702_v57  ;;  %v1705_v59 = vld [vmem:[#allocation8 + $0x7c0] sm:$0xff]  ;;  %v3968_v53 = vcombine.low %v1697_v46, %v1701_v54  ;;  %v1483_v42 = vld [vmem:[#allocation8 + $0xd0] sm:$0xff] }
 0x2c8   : > { %v1709_v34 = vld [vmem:[#allocation8 + $0x7e0] sm:$0xff]  ;;  %v1487_v45 = vld [vmem:[#allocation8 + $0xf0] sm:$0xff] }
 0x2c9   : > { %3143 = vmatpush1.bf16.msra.mxu0 %v3912_v2  ;;  %v3970_v2 = vcombine.low %v1698_v47, %v1702_v57  ;;  %v3976_v7 = vcombine.low %v1705_v59, %v1709_v34  ;;  %v1491_v46 = vld [vmem:[#allocation8 + $0x110] sm:$0xff]  ;;  %v1492_v47 = vld [vmem:[#allocation8 + $0x118] sm:$0xff] }
 0x2ca   : > { %3266 = vmatpush1.bf16.msra.mxu1 %v3914_v6  ;;  %3144 = vmatprep.subr.bf16.mxu0 %v3921_v3  ;;  %v3977_v6 = vcombine.high %v1705_v59, %v1709_v34  ;;  %v3979_v3 = vcombine.high %v1706_v5, %v1710_v62  ;;  %v1495_v54 = vld [vmem:[#allocation8 + $0x130] sm:$0xff]  ;;  %v1496_v57 = vld [vmem:[#allocation8 + $0x138] sm:$0xff] }
 0x2cb   : > { %3267 = vmatprep.subr.bf16.mxu1 %v3923_v8  ;;  %v1713_v8 = vld [vmem:[#allocation8 + $0x800] sm:$0x11]  ;;  %v1503_v59 = vld [vmem:[#allocation8 + $0x170] sm:$0xff]  ;;  %v1500_v34 = vld [vmem:[#allocation8 + $0x158] sm:$0xff]  ;;  %v3764_v62 = vcombine.low %v1491_v46, %v1495_v54 }
 0x2cc   : > { %v3985_v25 = vcombine.high %v1713_v8, %v1713_v8  ;;  %v1504_v5 = vld [vmem:[#allocation8 + $0x178] sm:$0xff] }
 0x2cd   : > { %3145 = vmatpush1.bf16.msra.mxu0 %v3920_v19  ;;  %v3984_v19 = vcombine.low %v1713_v8, %v1713_v8  ;;  %v1511_v8 = vld [vmem:[#allocation8 + $0x1b0] sm:$0xff] }
 0x2ce   : > { %3268 = vmatpush1.bf16.msra.mxu1 %v3922_v38  ;;  %3146 = vmatprep.subr.bf16.mxu0 %v3929_v40  ;;  %v3987_v38 = vcombine.high %v1714_v48, %v1714_v48  ;;  %v3986_v40 = vcombine.low %v1714_v48, %v1714_v48  ;;  %v1508_v48 = vld [vmem:[#allocation8 + $0x198] sm:$0xff] }
 0x2cf   : > { %3269 = vmatprep.subr.bf16.mxu1 %v3931_v39  ;;  %v1459_v39 = vld [vmem:[#allocation8 + $0x10] sm:$0xff] }
 0x2d0   : > { %v3732_v11 = vcombine.low %v1459_v39, %v1463_v61 }
 0x2d1   : > { %3147 = vmatpush1.bf16.msra.mxu0 %v3928_v55  ;;  %v3064_v55 = vsel %vm3062_vm3, %v3984_v19, 0 }
 0x2d2   : > { %3270 = vmatpush1.bf16.msra.mxu1 %v3930_v1  ;;  %3148 = vmatprep.subr.bf16.mxu0 %v3937_v0  ;;  %v3070_v1 = vsel %vm3062_vm3, %v3986_v40, 0  ;;  %v3733_v0 = vcombine.high %v1459_v39, %v1463_v61  ;;  %v1515_v40 = vld [vmem:[#allocation8 + $0x1d0] sm:$0xff]  ;;  %v1516_v61 = vld [vmem:[#allocation8 + $0x1d8] sm:$0xff] }
 0x2d3   : > { %3271 = vmatprep.subr.bf16.mxu1 %v3939_v13  ;;  %v3735_v13 = vcombine.high %v1460_v9, %v1464_v35  ;;  %v1519_v39 = vld [vmem:[#allocation8 + $0x1f0] sm:$0xff] }
 0x2d5   : > { %3149 = vmatpush1.bf16.msra.mxu0 %v3936_v60  ;;  %v1472_v60 = vld [vmem:[#allocation8 + $0x78] sm:$0xff] }
 0x2d6   : > { %3272 = vmatpush1.bf16.msra.mxu1 %v3938_v49  ;;  %3150 = vmatprep.subr.bf16.mxu0 %v3945_v12  ;;  %v5869_v49 = vpack.c.bf16 %v5853_v20, %v5853_v20  ;;  %v3734_v12 = vcombine.low %v1460_v9, %v1464_v35  ;;  %v3743_v63 = vcombine.high %v1468_v28, %v1472_v60  ;;  %v1520_v9 = vld [vmem:[#allocation8 + $0x1f8] sm:$0xff] }
 0x2d7   : > { %3273 = vmatprep.subr.bf16.mxu1 %v3947_v51  ;;  %v3741_v51 = vcombine.high %v1467_v24, %v1471_v50  ;;  %v3742_v20 = vcombine.low %v1468_v28, %v1472_v60  ;;  %v3788_v28 = vcombine.low %v1515_v40, %v1519_v39  ;;  %v3790_v60 = vcombine.low %v1516_v61, %v1520_v9 }
 0x2d9   : > { %3151 = vmatpush1.bf16.msra.mxu0 %v3944_v22  ;;  %v1480_v22 = vld [vmem:[#allocation8 + $0xb8] sm:$0xff] }
 0x2da   : > { %3274 = vmatpush1.bf16.msra.mxu1 %v3946_v21  ;;  %3152 = vmatprep.subr.bf16.mxu0 %v3953_v27  ;;  %v3740_v21 = vcombine.low %v1467_v24, %v1471_v50  ;;  %v3749_v27 = vcombine.high %v1475_v52, %v1479_v56  ;;  %v1527_v24 = vld [vmem:[#allocation8 + $0x230] sm:$0xff]  ;;  %v1524_v50 = vld [vmem:[#allocation8 + $0x218] sm:$0xff] }
 0x2db   : > { %3275 = vmatprep.subr.bf16.mxu1 %v3955_v29  ;;  %v3751_v29 = vcombine.high %v1476_v4, %v1480_v22 }
 0x2dd   : > { %3153 = vmatpush1.bf16.msra.mxu0 %v3952_v32  ;;  %v3748_v32 = vcombine.low %v1475_v52, %v1479_v56  ;;  %v1531_v52 = vld [vmem:[#allocation8 + $0x250] sm:$0xff] }
 0x2de   : > { %3276 = vmatpush1.bf16.msra.mxu1 %v3954_v33  ;;  %3154 = vmatprep.subr.bf16.mxu0 %v3961_v36  ;;  %v3750_v33 = vcombine.low %v1476_v4, %v1480_v22  ;;  %v3757_v36 = vcombine.high %v1483_v42, %v1487_v45  ;;  %v1535_v56 = vld [vmem:[#allocation8 + $0x270] sm:$0xff]  ;;  %v1536_v4 = vld [vmem:[#allocation8 + $0x278] sm:$0xff] }
 0x2df   : > { %3277 = vmatprep.subr.bf16.mxu1 %v3963_v31  ;;  %v3759_v31 = vcombine.high %v1484_v14, %v1488_v18 }
 0x2e1   : > { %3155 = vmatpush1.bf16.msra.mxu0 %v3960_v10  ;;  %v3758_v10 = vcombine.low %v1484_v14, %v1488_v18  ;;  %v1544_v14 = vld [vmem:[#allocation8 + $0x2b8] sm:$0xff]  ;;  %v3804_v18 = vcombine.low %v1531_v52, %v1535_v56 }
 0x2e2   : > { %3278 = vmatpush1.bf16.msra.mxu1 %v3962_v58  ;;  %3156 = vmatprep.subr.bf16.mxu0 %v3969_v15  ;;  %v3765_v58 = vcombine.high %v1491_v46, %v1495_v54  ;;  %v3767_v15 = vcombine.high %v1492_v47, %v1496_v57  ;;  %v1551_v46 = vld [vmem:[#allocation8 + $0x2f0] sm:$0xff]  ;;  %v1548_v54 = vld [vmem:[#allocation8 + $0x2d8] sm:$0xff] }
 0x2e3   : > { %3279 = vmatprep.subr.bf16.mxu1 %v3971_v26  ;;  %v1499_v26 = vld [vmem:[#allocation8 + $0x150] sm:$0xff] }
 0x2e5   : > { %3157 = vmatpush1.bf16.msra.mxu0 %v3968_v53  ;;  %v3766_v53 = vcombine.low %v1492_v47, %v1496_v57  ;;  %v1552_v47 = vld [vmem:[#allocation8 + $0x2f8] sm:$0xff] }
 0x2e6   : > { %3280 = vmatpush1.bf16.msra.mxu1 %v3970_v2  ;;  %3158 = vmatprep.subr.bf16.mxu0 %v3977_v6  ;;  %v3773_v2 = vcombine.high %v1499_v26, %v1503_v59  ;;  %v3775_v6 = vcombine.high %v1500_v34, %v1504_v5 }
 0x2e7   : > { %3281 = vmatprep.subr.bf16.mxu1 %v3979_v3  ;;  %v1507_v3 = vld [vmem:[#allocation8 + $0x190] sm:$0xff] }
 0x2e8   : > { %v3781_v19 = vcombine.high %v1507_v3, %v1511_v8  ;;  %v3780_v35 = vcombine.low %v1507_v3, %v1511_v8  ;;  %v1567_v3 = vld [vmem:[#allocation8 + $0x370] sm:$0xff]  ;;  %v1564_v8 = vld [vmem:[#allocation8 + $0x358] sm:$0xff] }
 0x2e9   : > { %3159 = vmatpush1.bf16.msra.mxu0 %v3976_v7  ;;  %v1512_v7 = vld [vmem:[#allocation8 + $0x1b8] sm:$0xff] }
 0x2ea   : > { %3282 = vmatpush1.bf16.msra.mxu1 %v3978_v41  ;;  %3992 = vmatprep.subr.msk.bf16.mxu0 %vm3062_vm3, %v3985_v25  ;;  %v3772_v41 = vcombine.low %v1499_v26, %v1503_v59  ;;  %v3774_v25 = vcombine.low %v1500_v34, %v1504_v5  ;;  %v1559_v26 = vld [vmem:[#allocation8 + $0x330] sm:$0xff]  ;;  %v1556_v59 = vld [vmem:[#allocation8 + $0x318] sm:$0xff] }
 0x2eb   : > { %3994 = vmatprep.subr.msk.bf16.mxu1 %vm3062_vm3, %v3987_v38  ;;  %v3783_v38 = vcombine.high %v1508_v48, %v1512_v7  ;;  %v1560_v34 = vld [vmem:[#allocation8 + $0x338] sm:$0xff] }
 0x2ec   : > { %3161 = vmatmul.mubr.bf16.vlgmr.msra.gmra.mrb[12].mxu0 %v5857_v37 }
 0x2ed   : > { %3284 = vmatmul.mubr.bf16.vlgmr.msra.gmra.mrb[12].mxu1 %v5857_v37  ;;  %3170 = vmatpush1.bf16.msra.mxu0 %v3064_v55  ;;  %v3782_v55 = vcombine.low %v1508_v48, %v1512_v7  ;;  %v1568_v48 = vld [vmem:[#allocation8 + $0x378] sm:$0xff] }
 0x2ee   : > { %3293 = vmatpush1.bf16.msra.mxu1 %v3070_v1  ;;  %3201 = vmatprep.mubr.bf16.mxu0 %v4951_v16  ;;  %v3789_v1 = vcombine.high %v1515_v40, %v1519_v39  ;;  %v1575_v40 = vld [vmem:[#allocation8 + $0x3b0] sm:$0xff]  ;;  %v1572_v39 = vld [vmem:[#allocation8 + $0x398] sm:$0xff] }
 0x2ef   : > { %3324 = vmatprep.mubr.bf16.mxu1 %v4951_v16  ;;  %3333 = vmatprep.subr.bf16.mxu0 %v3733_v0  ;;  %v3791_v0 = vcombine.high %v1516_v61, %v1520_v9  ;;  %v1576_v61 = vld [vmem:[#allocation8 + $0x3b8] sm:$0xff] }
 0x2f0   : > { %3456 = vmatprep.subr.bf16.mxu1 %v3735_v13  ;;  %v1523_v13 = vld [vmem:[#allocation8 + $0x210] sm:$0xff] }
 0x2f1   : > { %v3796_v22 = vcombine.low %v1523_v13, %v1527_v24 }
 0x2f8   : > { %3993 = vmatmul.mubr.msk.bf16.vlgmr.msra.gmra.mrb[12].mxu0 %vm352_vm0, %v5869_v49 }
 0x2f9   : > { %3995 = vmatmul.mubr.msk.bf16.vlgmr.msra.gmra.mrb[12].mxu1 %vm352_vm0, %v5869_v49  ;;  %3334 = vmatpush1.bf16.msra.mxu0 %v3732_v11  ;;  %v1528_v11 = vld [vmem:[#allocation8 + $0x238] sm:$0xff] }
 0x2fa   : > { %3457 = vmatpush1.bf16.msra.mxu1 %v3734_v12  ;;  %3365 = vmatprep.mubr.bf16.mxu0 %v5828_v23  ;;  %v3797_v12 = vcombine.high %v1523_v13, %v1527_v24  ;;  %v1583_v13 = vld [vmem:[#allocation8 + $0x3f0] sm:$0xff]  ;;  %v1580_v24 = vld [vmem:[#allocation8 + $0x3d8] sm:$0xff] }
 0x2fb   : > { %3488 = vmatprep.mubr.bf16.mxu1 %v5828_v23  ;;  %3335 = vmatprep.subr.bf16.mxu0 %v3741_v51  ;;  %v3756_v23 = vcombine.low %v1483_v42, %v1487_v45  ;;  %v3799_v51 = vcombine.high %v1524_v50, %v1528_v11  ;;  %v1543_v42 = vld [vmem:[#allocation8 + $0x2b0] sm:$0xff]  ;;  %v1540_v45 = vld [vmem:[#allocation8 + $0x298] sm:$0xff] }
 0x2fc   : > { %3458 = vmatprep.subr.bf16.mxu1 %v3743_v63  ;;  %v1532_v63 = vld [vmem:[#allocation8 + $0x258] sm:$0xff] }
 0x2fd   : > { %3336 = vmatpush1.bf16.msra.mxu0 %v3740_v21  ;;  %v3798_v21 = vcombine.low %v1524_v50, %v1528_v11  ;;  %v1584_v50 = vld [vmem:[#allocation8 + $0x3f8] sm:$0xff] }
 0x2fe   : > { %3459 = vmatpush1.bf16.msra.mxu1 %v3742_v20  ;;  %3337 = vmatprep.subr.bf16.mxu0 %v3749_v27  ;;  %v3805_v20 = vcombine.high %v1531_v52, %v1535_v56  ;;  %v3807_v27 = vcombine.high %v1532_v63, %v1536_v4  ;;  %v1591_v52 = vld [vmem:[#allocation8 + $0x430] sm:$0xff]  ;;  %v1588_v56 = vld [vmem:[#allocation8 + $0x418] sm:$0xff] }
 0x2ff   : > { %3460 = vmatprep.subr.bf16.mxu1 %v3751_v29  ;;  %v1539_v29 = vld [vmem:[#allocation8 + $0x290] sm:$0xff] }
 0x300   : > { %v3812_v57 = vcombine.low %v1539_v29, %v1543_v42 }
 0x301   : > { %3338 = vmatpush1.bf16.msra.mxu0 %v3748_v32  ;;  %v3806_v32 = vcombine.low %v1532_v63, %v1536_v4  ;;  %v1592_v63 = vld [vmem:[#allocation8 + $0x438] sm:$0xff] }
 0x302   : > { %3461 = vmatpush1.bf16.msra.mxu1 %v3750_v33  ;;  %3339 = vmatprep.subr.bf16.mxu0 %v3757_v36  ;;  %v3813_v33 = vcombine.high %v1539_v29, %v1543_v42  ;;  %v3815_v36 = vcombine.high %v1540_v45, %v1544_v14  ;;  %v1599_v29 = vld [vmem:[#allocation8 + $0x470] sm:$0xff] }
 0x303   : > { %3462 = vmatprep.subr.bf16.mxu1 %v3759_v31  ;;  %v1547_v31 = vld [vmem:[#allocation8 + $0x2d0] sm:$0xff] }
 0x304   : > { %v3820_v5 = vcombine.low %v1547_v31, %v1551_v46 }
 0x305   : > { %3340 = vmatpush1.bf16.msra.mxu0 %v3756_v23  ;;  %v3814_v23 = vcombine.low %v1540_v45, %v1544_v14  ;;  %v1596_v45 = vld [vmem:[#allocation8 + $0x458] sm:$0xff] }
 0x306   : > { %3463 = vmatpush1.bf16.msra.mxu1 %v3758_v10  ;;  %3341 = vmatprep.subr.bf16.mxu0 %v3765_v58  ;;  %v3821_v10 = vcombine.high %v1547_v31, %v1551_v46  ;;  %v3823_v58 = vcombine.high %v1548_v54, %v1552_v47  ;;  %v1600_v14 = vld [vmem:[#allocation8 + $0x478] sm:$0xff] }
 0x307   : > { %3464 = vmatprep.subr.bf16.mxu1 %v3767_v15  ;;  %v1555_v15 = vld [vmem:[#allocation8 + $0x310] sm:$0xff]  ;;  %v3871_v31 = vcombine.high %v1596_v45, %v1600_v14  ;;  %v1604_v46 = vld [vmem:[#allocation8 + $0x498] sm:$0xff] }
 0x308   : > { %v3828_v7 = vcombine.low %v1555_v15, %v1559_v26 }
 0x309   : > { %3342 = vmatpush1.bf16.msra.mxu0 %v3764_v62  ;;  %v3822_v62 = vcombine.low %v1548_v54, %v1552_v47  ;;  %v1608_v54 = vld [vmem:[#allocation8 + $0x4b8] sm:$0xff] }
 0x30a   : > { %3465 = vmatpush1.bf16.msra.mxu1 %v3766_v53  ;;  %3343 = vmatprep.subr.bf16.mxu0 %v3773_v2  ;;  %v3829_v53 = vcombine.high %v1555_v15, %v1559_v26  ;;  %v3831_v2 = vcombine.high %v1556_v59, %v1560_v34  ;;  %v1615_v15 = vld [vmem:[#allocation8 + $0x4f0] sm:$0xff]  ;;  %v1612_v26 = vld [vmem:[#allocation8 + $0x4d8] sm:$0xff] }
 0x30b   : > { %3466 = vmatprep.subr.bf16.mxu1 %v3775_v6  ;;  %v1563_v6 = vld [vmem:[#allocation8 + $0x350] sm:$0xff] }
 0x30c   : > { %v3836_v9 = vcombine.low %v1563_v6, %v1567_v3 }
 0x30d   : > { %3344 = vmatpush1.bf16.msra.mxu0 %v3772_v41  ;;  %v3830_v41 = vcombine.low %v1556_v59, %v1560_v34  ;;  %v1616_v59 = vld [vmem:[#allocation8 + $0x4f8] sm:$0xff] }
 0x30e   : > { %3467 = vmatpush1.bf16.msra.mxu1 %v3774_v25  ;;  %3345 = vmatprep.subr.bf16.mxu0 %v3781_v19  ;;  %v3837_v25 = vcombine.high %v1563_v6, %v1567_v3  ;;  %v3839_v19 = vcombine.high %v1564_v8, %v1568_v48  ;;  %v1620_v6 = vld [vmem:[#allocation8 + $0x518] sm:$0xff] }
 0x30f   : > { %3468 = vmatprep.subr.bf16.mxu1 %v3783_v38  ;;  %v1571_v38 = vld [vmem:[#allocation8 + $0x390] sm:$0xff]  ;;  %v1624_v3 = vld [vmem:[#allocation8 + $0x538] sm:$0xff] }
 0x310   : > { %v3844_v11 = vcombine.low %v1571_v38, %v1575_v40 }
 0x311   : > { %3346 = vmatpush1.bf16.msra.mxu0 %v3780_v35  ;;  %v3838_v35 = vcombine.low %v1564_v8, %v1568_v48  ;;  %v3886_v8 = vcombine.low %v1612_v26, %v1616_v59 }
 0x312   : > { %3469 = vmatpush1.bf16.msra.mxu1 %v3782_v55  ;;  %3347 = vmatprep.subr.bf16.mxu0 %v3789_v1  ;;  %v3845_v55 = vcombine.high %v1571_v38, %v1575_v40  ;;  %v3847_v1 = vcombine.high %v1572_v39, %v1576_v61  ;;  %v1632_v38 = vld [vmem:[#allocation8 + $0x578] sm:$0xff] }
 0x313   : > { %3470 = vmatprep.subr.bf16.mxu1 %v3791_v0  ;;  %v1579_v0 = vld [vmem:[#allocation8 + $0x3d0] sm:$0xff] }
 0x314   : > { %v3852_v4 = vcombine.low %v1579_v0, %v1583_v13 }
 0x315   : > { %3348 = vmatpush1.bf16.msra.mxu0 %v3788_v28  ;;  %v3846_v28 = vcombine.low %v1572_v39, %v1576_v61  ;;  %v3894_v39 = vcombine.low %v1620_v6, %v1624_v3 }
 0x316   : > { %3471 = vmatpush1.bf16.msra.mxu1 %v3790_v60  ;;  %3349 = vmatprep.subr.bf16.mxu0 %v3797_v12  ;;  %v3853_v60 = vcombine.high %v1579_v0, %v1583_v13  ;;  %v3855_v12 = vcombine.high %v1580_v24, %v1584_v50  ;;  %v1640_v0 = vld [vmem:[#allocation8 + $0x5b8] sm:$0xff] }
 0x317   : > { %3472 = vmatprep.subr.bf16.mxu1 %v3799_v51  ;;  %v1587_v51 = vld [vmem:[#allocation8 + $0x410] sm:$0xff] }
 0x318   : > { %v3860_v42 = vcombine.low %v1587_v51, %v1591_v52 }
 0x319   : > { %3350 = vmatpush1.bf16.msra.mxu0 %v3796_v22  ;;  %v3854_v22 = vcombine.low %v1580_v24, %v1584_v50 }
 0x31a   : > { %3473 = vmatpush1.bf16.msra.mxu1 %v3798_v21  ;;  %3351 = vmatprep.subr.bf16.mxu0 %v3805_v20  ;;  %v3861_v21 = vcombine.high %v1587_v51, %v1591_v52  ;;  %v3863_v20 = vcombine.high %v1588_v56, %v1592_v63  ;;  %v1648_v51 = vld [vmem:[#allocation8 + $0x5f8] sm:$0xff] }
 0x31b   : > { %3474 = vmatprep.subr.bf16.mxu1 %v3807_v27  ;;  %v1595_v27 = vld [vmem:[#allocation8 + $0x450] sm:$0xff] }
 0x31c   : > { %v3868_v47 = vcombine.low %v1595_v27, %v1599_v29 }
 0x31d   : > { %3352 = vmatpush1.bf16.msra.mxu0 %v3804_v18  ;;  %v3862_v18 = vcombine.low %v1588_v56, %v1592_v63 }
 0x31e   : > { %3475 = vmatpush1.bf16.msra.mxu1 %v3806_v32  ;;  %3353 = vmatprep.subr.bf16.mxu0 %v3813_v33  ;;  %v3869_v32 = vcombine.high %v1595_v27, %v1599_v29  ;;  %v1603_v33 = vld [vmem:[#allocation8 + $0x490] sm:$0xff]  ;;  %v1656_v27 = vld [vmem:[#allocation8 + $0x638] sm:$0xff] }
 0x31f   : > { %3476 = vmatprep.subr.bf16.mxu1 %v3815_v36  ;;  %v1607_v36 = vld [vmem:[#allocation8 + $0x4b0] sm:$0xff] }
 0x320   : > { %v3876_v34 = vcombine.low %v1603_v33, %v1607_v36 }
 0x321   : > { %3354 = vmatpush1.bf16.msra.mxu0 %v3812_v57  ;;  %v3870_v57 = vcombine.low %v1596_v45, %v1600_v14 }
 0x322   : > { %3477 = vmatpush1.bf16.msra.mxu1 %v3814_v23  ;;  %3355 = vmatprep.subr.bf16.mxu0 %v3821_v10  ;;  %v3877_v23 = vcombine.high %v1603_v33, %v1607_v36  ;;  %v3879_v10 = vcombine.high %v1604_v46, %v1608_v54  ;;  %v1660_v33 = vld [vmem:[#allocation8 + $0x658] sm:$0xff] }
 0x323   : > { %3478 = vmatprep.subr.bf16.mxu1 %v3823_v58  ;;  %v1611_v58 = vld [vmem:[#allocation8 + $0x4d0] sm:$0xff]  ;;  %v1664_v36 = vld [vmem:[#allocation8 + $0x678] sm:$0xff] }
 0x325   : > { %3356 = vmatpush1.bf16.msra.mxu0 %v3820_v5  ;;  %v3885_v5 = vcombine.high %v1611_v58, %v1615_v15 }
 0x326   : > { %3479 = vmatpush1.bf16.msra.mxu1 %v3822_v62  ;;  %3357 = vmatprep.subr.bf16.mxu0 %v3829_v53  ;;  %v3887_v62 = vcombine.high %v1612_v26, %v1616_v59  ;;  %v1619_v53 = vld [vmem:[#allocation8 + $0x510] sm:$0xff]  ;;  %v3934_v26 = vcombine.low %v1660_v33, %v1664_v36 }
 0x327   : > { %3480 = vmatprep.subr.bf16.mxu1 %v3831_v2  ;;  %v1623_v2 = vld [vmem:[#allocation8 + $0x530] sm:$0xff] }
 0x328   : > { %v3893_v48 = vcombine.high %v1619_v53, %v1623_v2  ;;  %v3892_v40 = vcombine.low %v1619_v53, %v1623_v2  ;;  %v1680_v53 = vld [vmem:[#allocation8 + $0x6f8] sm:$0xff] }
 0x329   : > { %3358 = vmatpush1.bf16.msra.mxu0 %v3828_v7  ;;  %v3895_v7 = vcombine.high %v1620_v6, %v1624_v3 }
 0x32a   : > { %3481 = vmatpush1.bf16.msra.mxu1 %v3830_v41  ;;  %3359 = vmatprep.subr.bf16.mxu0 %v3837_v25  ;;  %v1627_v41 = vld [vmem:[#allocation8 + $0x550] sm:$0xff] }
 0x32b   : > { %3482 = vmatprep.subr.bf16.mxu1 %v3839_v19  ;;  %v1631_v25 = vld [vmem:[#allocation8 + $0x570] sm:$0xff]  ;;  %v1628_v19 = vld [vmem:[#allocation8 + $0x558] sm:$0xff] }
 0x32c   : > { %v3901_v61 = vcombine.high %v1627_v41, %v1631_v25  ;;  %v3900_v13 = vcombine.low %v1627_v41, %v1631_v25  ;;  %v3902_v24 = vcombine.low %v1628_v19, %v1632_v38  ;;  %v1688_v41 = vld [vmem:[#allocation8 + $0x738] sm:$0xff] }
 0x32d   : > { %3360 = vmatpush1.bf16.msra.mxu0 %v3836_v9  ;;  %v3903_v9 = vcombine.high %v1628_v19, %v1632_v38 }
 0x32e   : > { %3483 = vmatpush1.bf16.msra.mxu1 %v3838_v35  ;;  %3361 = vmatprep.subr.bf16.mxu0 %v3845_v55  ;;  %v1635_v35 = vld [vmem:[#allocation8 + $0x590] sm:$0xff] }
 0x32f   : > { %3484 = vmatprep.subr.bf16.mxu1 %v3847_v1  ;;  %v1639_v55 = vld [vmem:[#allocation8 + $0x5b0] sm:$0xff]  ;;  %v1636_v1 = vld [vmem:[#allocation8 + $0x598] sm:$0xff] }
 0x330   : > { %v3909_v50 = vcombine.high %v1635_v35, %v1639_v55  ;;  %v3908_v52 = vcombine.low %v1635_v35, %v1639_v55  ;;  %v3910_v56 = vcombine.low %v1636_v1, %v1640_v0  ;;  %v1696_v35 = vld [vmem:[#allocation8 + $0x778] sm:$0xff] }
 0x331   : > { %3362 = vmatpush1.bf16.msra.mxu0 %v3844_v11  ;;  %v3911_v11 = vcombine.high %v1636_v1, %v1640_v0 }
 0x332   : > { %3485 = vmatpush1.bf16.msra.mxu1 %v3846_v28  ;;  %3363 = vmatprep.subr.bf16.mxu0 %v3853_v60  ;;  %v1643_v28 = vld [vmem:[#allocation8 + $0x5d0] sm:$0xff] }
 0x333   : > { %3486 = vmatprep.subr.bf16.mxu1 %v3855_v12  ;;  %v1647_v60 = vld [vmem:[#allocation8 + $0x5f0] sm:$0xff]  ;;  %v1644_v12 = vld [vmem:[#allocation8 + $0x5d8] sm:$0xff] }
 0x334   : > { %v3917_v63 = vcombine.high %v1643_v28, %v1647_v60  ;;  %v3916_v29 = vcombine.low %v1643_v28, %v1647_v60  ;;  %v1704_v28 = vld [vmem:[#allocation8 + $0x7b8] sm:$0xff] }
 0x335   : > { %3364 = vmatpush1.bf16.msra.mxu0 %v3852_v4  ;;  %v3919_v4 = vcombine.high %v1644_v12, %v1648_v51 }
 0x336   : > { %3487 = vmatpush1.bf16.msra.mxu1 %v3854_v22  ;;  %3374 = vmatprep.subr.bf16.mxu0 %v3861_v21  ;;  %v1651_v22 = vld [vmem:[#allocation8 + $0x610] sm:$0xff] }
 0x337   : > { %3497 = vmatprep.subr.bf16.mxu1 %v3863_v20  ;;  %v1655_v21 = vld [vmem:[#allocation8 + $0x630] sm:$0xff]  ;;  %v1652_v20 = vld [vmem:[#allocation8 + $0x618] sm:$0xff] }
 0x338   : > { %3366 = vmatmul.mubr.bf16.vlgmr.msra.gmra.mrb[16].mxu0 %v5830_v44  ;;  %v3925_v45 = vcombine.high %v1651_v22, %v1655_v21  ;;  %v3927_v14 = vcombine.high %v1652_v20, %v1656_v27 }
 0x339   : > { %3489 = vmatmul.mubr.bf16.vlgmr.msra.gmra.mrb[16].mxu1 %v5830_v44  ;;  %3375 = vmatpush1.bf16.msra.mxu0 %v3860_v42  ;;  %v3878_v44 = vcombine.low %v1604_v46, %v1608_v54  ;;  %v3918_v42 = vcombine.low %v1644_v12, %v1648_v51  ;;  %v3926_v46 = vcombine.low %v1652_v20, %v1656_v27 }
 0x33a   : > { %3406 = vmatprep.mubr.bf16.mxu0 %v5845_v30  ;;  %3498 = vmatpush1.bf16.msra.mxu1 %v3862_v18  ;;  %v1659_v18 = vld [vmem:[#allocation8 + $0x650] sm:$0xff] }
 0x33b   : > { %3529 = vmatprep.mubr.bf16.mxu1 %v5845_v30  ;;  %3376 = vmatprep.subr.bf16.mxu0 %v3869_v32  ;;  %v3884_v30 = vcombine.low %v1611_v58, %v1615_v15  ;;  %v1663_v32 = vld [vmem:[#allocation8 + $0x670] sm:$0xff]  ;;  %v1672_v58 = vld [vmem:[#allocation8 + $0x6b8] sm:$0xff] }
 0x33c   : > { %3499 = vmatprep.subr.bf16.mxu1 %v3871_v31  ;;  %v3924_v31 = vcombine.low %v1651_v22, %v1655_v21  ;;  %v3933_v54 = vcombine.high %v1659_v18, %v1663_v32  ;;  %v3932_v15 = vcombine.low %v1659_v18, %v1663_v32  ;;  %v1712_v22 = vld [vmem:[#allocation8 + $0x7f8] sm:$0xff] }
 0x33d   : > { %3377 = vmatpush1.bf16.msra.mxu0 %v3868_v47  ;;  %v3935_v47 = vcombine.high %v1660_v33, %v1664_v36 }
 0x33e   : > { %3500 = vmatpush1.bf16.msra.mxu1 %v3870_v57  ;;  %3378 = vmatprep.subr.bf16.mxu0 %v3877_v23  ;;  %v1667_v57 = vld [vmem:[#allocation8 + $0x690] sm:$0xff] }
 0x33f   : > { %3501 = vmatprep.subr.bf16.mxu1 %v3879_v10  ;;  %v1671_v23 = vld [vmem:[#allocation8 + $0x6b0] sm:$0xff]  ;;  %v1668_v10 = vld [vmem:[#allocation8 + $0x698] sm:$0xff] }
 0x340   : > { %v3941_v59 = vcombine.high %v1667_v57, %v1671_v23  ;;  %v3940_v2 = vcombine.low %v1667_v57, %v1671_v23  ;;  %v3942_v6 = vcombine.low %v1668_v10, %v1672_v58  ;;  %v1729_v57 = vsub.s32 2, %v5817_v17 }
 0x341   : > { %3379 = vmatpush1.bf16.msra.mxu0 %v3876_v34  ;;  %v3943_v34 = vcombine.high %v1668_v10, %v1672_v58  ;;  %v1725_v23 = vsub.s32 1, %v5817_v17  ;;  %v1733_v10 = vsub.s32 3, %v5817_v17 }
 0x342   : > { %3502 = vmatpush1.bf16.msra.mxu1 %v3878_v44  ;;  %3380 = vmatprep.subr.bf16.mxu0 %v3885_v5  ;;  %v1675_v44 = vld [vmem:[#allocation8 + $0x6d0] sm:$0xff] }
 0x343   : > { %3503 = vmatprep.subr.bf16.mxu1 %v3887_v62  ;;  %v1679_v5 = vld [vmem:[#allocation8 + $0x6f0] sm:$0xff]  ;;  %v1676_v62 = vld [vmem:[#allocation8 + $0x6d8] sm:$0xff] }
 0x344   : > { %v3949_v3 = vcombine.high %v1675_v44, %v1679_v5  ;;  %v3948_v25 = vcombine.low %v1675_v44, %v1679_v5  ;;  %v3950_v19 = vcombine.low %v1676_v62, %v1680_v53 }
 0x345   : > { %3381 = vmatpush1.bf16.msra.mxu0 %v3884_v30  ;;  %v3951_v30 = vcombine.high %v1676_v62, %v1680_v53 }
 0x346   : > { %3504 = vmatpush1.bf16.msra.mxu1 %v3886_v8  ;;  %3382 = vmatprep.subr.bf16.mxu0 %v3893_v48  ;;  %v1683_v8 = vld [vmem:[#allocation8 + $0x710] sm:$0xff] }
 0x347   : > { %3505 = vmatprep.subr.bf16.mxu1 %v3895_v7  ;;  %v1687_v48 = vld [vmem:[#allocation8 + $0x730] sm:$0xff]  ;;  %v1684_v7 = vld [vmem:[#allocation8 + $0x718] sm:$0xff] }
 0x348   : > { %v3957_v38 = vcombine.high %v1683_v8, %v1687_v48  ;;  %v3956_v55 = vcombine.low %v1683_v8, %v1687_v48  ;;  %v3958_v1 = vcombine.low %v1684_v7, %v1688_v41  ;;  %v1745_v8 = vsub.s32 6, %v5817_v17 }
 0x349   : > { %3383 = vmatpush1.bf16.msra.mxu0 %v3892_v40  ;;  %v3959_v40 = vcombine.high %v1684_v7, %v1688_v41  ;;  %v1741_v48 = vsub.s32 5, %v5817_v17  ;;  %v1749_v7 = vsub.s32 7, %v5817_v17 }
 0x34a   : > { %3506 = vmatpush1.bf16.msra.mxu1 %v3894_v39  ;;  %3384 = vmatprep.subr.bf16.mxu0 %v3901_v61  ;;  %v1691_v39 = vld [vmem:[#allocation8 + $0x750] sm:$0xff] }
 0x34b   : > { %3507 = vmatprep.subr.bf16.mxu1 %v3903_v9  ;;  %v1695_v61 = vld [vmem:[#allocation8 + $0x770] sm:$0xff]  ;;  %v1692_v9 = vld [vmem:[#allocation8 + $0x758] sm:$0xff] }
 0x34c   : > { %v3965_v0 = vcombine.high %v1691_v39, %v1695_v61  ;;  %v3964_v60 = vcombine.low %v1691_v39, %v1695_v61  ;;  %v3966_v12 = vcombine.low %v1692_v9, %v1696_v35 }
 0x34d   : > { %3385 = vmatpush1.bf16.msra.mxu0 %v3900_v13  ;;  %v3967_v13 = vcombine.high %v1692_v9, %v1696_v35 }
 0x34e   : > { %3508 = vmatpush1.bf16.msra.mxu1 %v3902_v24  ;;  %3386 = vmatprep.subr.bf16.mxu0 %v3909_v50  ;;  %v1699_v24 = vld [vmem:[#allocation8 + $0x790] sm:$0xff] }
 0x34f   : > { %3509 = vmatprep.subr.bf16.mxu1 %v3911_v11  ;;  %v1703_v50 = vld [vmem:[#allocation8 + $0x7b0] sm:$0xff]  ;;  %v1700_v11 = vld [vmem:[#allocation8 + $0x798] sm:$0xff] }
 0x350   : > { %v3973_v51 = vcombine.high %v1699_v24, %v1703_v50  ;;  %v3972_v21 = vcombine.low %v1699_v24, %v1703_v50  ;;  %v3974_v20 = vcombine.low %v1700_v11, %v1704_v28 }
 0x351   : > { %3387 = vmatpush1.bf16.msra.mxu0 %v3908_v52  ;;  %v3975_v52 = vcombine.high %v1700_v11, %v1704_v28 }
 0x352   : > { %3510 = vmatpush1.bf16.msra.mxu1 %v3910_v56  ;;  %3388 = vmatprep.subr.bf16.mxu0 %v3917_v63  ;;  %v1707_v56 = vld [vmem:[#allocation8 + $0x7d0] sm:$0xff] }
 0x353   : > { %3511 = vmatprep.subr.bf16.mxu1 %v3919_v4  ;;  %v1711_v63 = vld [vmem:[#allocation8 + $0x7f0] sm:$0xff]  ;;  %v1708_v4 = vld [vmem:[#allocation8 + $0x7d8] sm:$0xff] }
 0x354   : > { %v3981_v27 = vcombine.high %v1707_v56, %v1711_v63  ;;  %v3982_v18 = vcombine.low %v1708_v4, %v1712_v22 }
 0x355   : > { %3389 = vmatpush1.bf16.msra.mxu0 %v3916_v29  ;;  %v3983_v29 = vcombine.high %v1708_v4, %v1712_v22 }
 0x356   : > { %3512 = vmatpush1.bf16.msra.mxu1 %v3918_v42  ;;  %3390 = vmatprep.subr.bf16.mxu0 %v3925_v45  ;;  %v1715_v42 = vld [vmem:[#allocation8 + $0x810] sm:$0x11]  ;;  %v1716_v45 = vld [vmem:[#allocation8 + $0x818] sm:$0x11] }
 0x357   : > { %3513 = vmatprep.subr.bf16.mxu1 %v3927_v14  ;;  %v3980_v14 = vcombine.low %v1707_v56, %v1711_v63  ;;  %v3989_v32 = vcombine.high %v1715_v42, %v1715_v42  ;;  %v3988_v33 = vcombine.low %v1715_v42, %v1715_v42  ;;  %v3991_v36 = vcombine.high %v1716_v45, %v1716_v45 }
 0x359   : > { %3391 = vmatpush1.bf16.msra.mxu0 %v3924_v31  ;;  %v3990_v31 = vcombine.low %v1716_v45, %v1716_v45 }
 0x35a   : > { %3514 = vmatpush1.bf16.msra.mxu1 %v3926_v46  ;;  %3392 = vmatprep.subr.bf16.mxu0 %v3933_v54  ;;  %v3076_v46 = vsel %vm3062_vm3, %v3988_v33, 0 }
 0x35b   : > { %3515 = vmatprep.subr.bf16.mxu1 %v3935_v47  ;;  %v3082_v54 = vsel %vm3062_vm3, %v3990_v31, 0  ;;  %v1717_v47 = vld [vmem:[#allocation10] sm:$0xff] }
 0x35c   : > { %v1730_v58 = vrot.slane %v1717_v47, %v1729_v57 }
 0x35d   : > { %3393 = vmatpush1.bf16.msra.mxu0 %v3932_v15  ;;  %v1726_v15 = vrot.slane %v1717_v47, %v1725_v23 }
 0x35e   : > { %3516 = vmatpush1.bf16.msra.mxu1 %v3934_v26  ;;  %3394 = vmatprep.subr.bf16.mxu0 %v3941_v59  ;;  %v1734_v26 = vrot.slane %v1717_v47, %v1733_v10 }
 0x35f   : > { %3517 = vmatprep.subr.bf16.mxu1 %v3943_v34 }
 0x361   : > { %3395 = vmatpush1.bf16.msra.mxu0 %v3940_v2 }
 0x362   : > { %3518 = vmatpush1.bf16.msra.mxu1 %v3942_v6  ;;  %3396 = vmatprep.subr.bf16.mxu0 %v3949_v3 }
 0x363   : > { %3519 = vmatprep.subr.bf16.mxu1 %v3951_v30  ;;  %v1737_v30 = vsub.s32 4, %v5817_v17 }
 0x365   : > { %3397 = vmatpush1.bf16.msra.mxu0 %v3948_v25  ;;  %v1738_v41 = vrot.slane %v1717_v47, %v1737_v30  ;;  %v1746_v25 = vrot.slane %v1717_v47, %v1745_v8 }
 0x366   : > { %3520 = vmatpush1.bf16.msra.mxu1 %v3950_v19  ;;  %3398 = vmatprep.subr.bf16.mxu0 %v3957_v38  ;;  %v1742_v19 = vrot.slane %v1717_v47, %v1741_v48  ;;  %v1750_v38 = vrot.slane %v1717_v47, %v1749_v7 }
 0x367   : > { %3521 = vmatprep.subr.bf16.mxu1 %v3959_v40 }
 0x369   : > { %3399 = vmatpush1.bf16.msra.mxu0 %v3956_v55 }
 0x36a   : > { %3522 = vmatpush1.bf16.msra.mxu1 %v3958_v1  ;;  %3400 = vmatprep.subr.bf16.mxu0 %v3965_v0 }
 0x36b   : > { %3523 = vmatprep.subr.bf16.mxu1 %v3967_v13 }
 0x36d   : > { %3401 = vmatpush1.bf16.msra.mxu0 %v3964_v60 }
 0x36e   : > { %3524 = vmatpush1.bf16.msra.mxu1 %v3966_v12  ;;  %3402 = vmatprep.subr.bf16.mxu0 %v3973_v51 }
 0x36f   : > { %3525 = vmatprep.subr.bf16.mxu1 %v3975_v52 }
 0x371   : > { %3403 = vmatpush1.bf16.msra.mxu0 %v3972_v21 }
 0x372   : > { %3526 = vmatpush1.bf16.msra.mxu1 %v3974_v20  ;;  %3404 = vmatprep.subr.bf16.mxu0 %v3981_v27 }
 0x373   : > { %3527 = vmatprep.subr.bf16.mxu1 %v3983_v29 }
 0x375   : > { %3405 = vmatpush1.bf16.msra.mxu0 %v3980_v14 }
 0x376   : > { %3528 = vmatpush1.bf16.msra.mxu1 %v3982_v18  ;;  %3996 = vmatprep.subr.msk.bf16.mxu0 %vm3062_vm3, %v3989_v32 }
 0x377   : > { %3998 = vmatprep.subr.msk.bf16.mxu1 %vm3062_vm3, %v3991_v36 }
 0x378   : > { %3407 = vmatmul.mubr.bf16.vlgmr.msra.gmra.mrb[16].mxu0 %v5857_v37 }
 0x379   : > { %3530 = vmatmul.mubr.bf16.vlgmr.msra.gmra.mrb[16].mxu1 %v5857_v37  ;;  %3416 = vmatpush1.bf16.msra.mxu0 %v3076_v46  ;;  %v1722_v37 = vrot.slane %v1717_v47, %v5820_v43 }
 0x37a   : > { %3539 = vmatpush1.bf16.msra.mxu1 %v3082_v54  ;;  %3447 = vmatprep.mubr.bf16.mxu0 %v4951_v16 }
 0x37b   : > { %3570 = vmatprep.mubr.bf16.mxu1 %v4951_v16 }
 0x384   : > { %3997 = vmatmul.mubr.msk.bf16.vlgmr.msra.gmra.mrb[16].mxu0 %vm352_vm0, %v5869_v49 }
 0x385   : > { %3999 = vmatmul.mubr.msk.bf16.vlgmr.msra.gmra.mrb[16].mxu1 %vm352_vm0, %v5869_v49 }
 0x3cb   : > { %v3203_v16 = vpop.f32.mrb[12].mxu0 }
 0x3cc   : > { %v4568_v59 = vadd.f32 %v3203_v16, %v1722_v37  ;;  %v3326_v34 = vpop.f32.mrb[12].mxu1  ;;  %v3205_v44 = vpop.f32.mrb[13].mxu0 }
 0x3cd   : > { %v4570_v5 = vadd.f32 %v3326_v34, %v1730_v58  ;;  %v4569_v62 = vadd.f32 %v3205_v44, %v1726_v15  ;;  %v3328_v49 = vpop.f32.mrb[13].mxu1  ;;  %v3207_v53 = vpop.f32.mrb[14].mxu0 }
 0x3ce   : > { %3579 = vst [vmem:[%s5898_s12] sm:$0xff] %v4568_v59  ;;  %v4571_v2 = vadd.f32 %v3328_v49, %v1734_v26  ;;  %v3330_v43 = vpop.f32.mrb[14].mxu1  ;;  %v3208_v6 = vpop.f32.mrb[15].mxu0 }
 0x3cf   : > { %3581 = vst [vmem:[%s5898_s12 + $0x10] sm:$0xff] %v4570_v5  ;;  %3580 = vst [vmem:[%s5898_s12 + $0x8] sm:$0xff] %v4569_v62  ;;  %v3331_v3 = vpop.f32.mrb[15].mxu1 }
 0x3d0   : > { %3582 = vst [vmem:[%s5898_s12 + $0x18] sm:$0xff] %v4571_v2 }
 0x457   : > { %v3449_v40 = vpop.f32.mrb[16].mxu0 }
 0x458   : > { %v4572_v39 = vadd.f32 %v3449_v40, %v1738_v41  ;;  %v3572_v61 = vpop.f32.mrb[16].mxu1  ;;  %v3451_v9 = vpop.f32.mrb[17].mxu0 }
 0x459   : > { %v4574_v35 = vadd.f32 %v3572_v61, %v1746_v25  ;;  %v4573_v55 = vadd.f32 %v3451_v9, %v1742_v19  ;;  %v3574_v1 = vpop.f32.mrb[17].mxu1  ;;  %v3453_v0 = vpop.f32.mrb[18].mxu0 }
 0x45a   : > { %3583 = vst [vmem:[%s5898_s12 + $0x20] sm:$0xff] %v4572_v39  ;;  %v4575_v17 = vadd.f32 %v3574_v1, %v1750_v38  ;;  %v3576_v13 = vpop.f32.mrb[18].mxu1  ;;  %v3454_v24 = vpop.f32.mrb[19].mxu0 }
 0x45b   : > { %3585 = vst [vmem:[%s5898_s12 + $0x30] sm:$0xff] %v4574_v35  ;;  %3584 = vst [vmem:[%s5898_s12 + $0x28] sm:$0xff] %v4573_v55  ;;  %v3577_v50 = vpop.f32.mrb[19].mxu1 }
 0x45c   : > { %3586 = vst [vmem:[%s5898_s12 + $0x38] sm:$0xff] %v4575_v17 }
 0x45d   : > { %4876 = shalt.err (!%p4873_p12)
}
 0x45e   : > { %s4877_s15 = scalar_lea.hbm %s5914_s27, 1024  ;;  %s4881_s11 = scalar_lea.hbm %s5967_s6, 2048 }
 0x45f   : > { %p4878_p13 = scmp.ne.s32.totalorder %s5914_s27, %s4877_s15  ;;  %p4882_p9 = scmp.lt.u32.totalorder %s5914_s27, %s5967_s6 }
 0x460   : > { %p4883_p4 = scmp.lt.u32.totalorder %s4881_s11, %s4877_s15  ;;  %p4885_p0 = scmp.lt.u32.totalorder %s4877_s15, %s5914_s27 }
 0x461   : > { %p4879_p1 = pnand %p4878_p13, %p5984_p6 }
 0x462   : > { %p4884_p8 = por %p4883_p4, %p4882_p9 }
 0x463   : > { %p4880_p7 = pneg %p4879_p1 }
 0x464   : > { %p4886_p2 = por %p4885_p0, %p4884_p8 }
 0x466   : > { %p4887_p5 = pnand %p4886_p2, %p4880_p7 }
 0x468   : > { %4890 = shalt.err (!%p4887_p5)
}
 0x469   : > { %4629 = dma.vmem_to_hbm [thread:$0]  (%p5984_p6), %s5916_s10, 1024, %s5914_s27, %s3588_s9  }
 0x46a PF: > { %s3614_s13 = sand.u32 1, %s4925_s21   ;;  %p5985_p10 = scmp.ne.s32.totalorder %s5977_s19, 0 }
 0x46b   : > { %p5986_p11 = scmp.ge.s32.totalorder %s4937_s24, 2  ;;  %s3615_s17 = scalar_lea.sflag [#allocation4], %s3614_s13 }
 0x46d   : > { %p4649_p3 = pnand %p5986_p11, %p5985_p10 }
 0x46f   : > { %4920 = dma.done.wait (!%p4649_p3), %s3615_s17, 1024  }
 0x470   : > { %4922 = vsyncadd (!%p4649_p3), %s3615_s17, 4294966272  ;;  %p21_p12 = scmp.ge.s32.totalorder %s5124_s7, 4   ;;  %s5987_s21 = smov %s4929_s22 }
 0x471   : > { %s5988_s22 = smov %s4933_s23  ;;  %s5989_s23 = smov %s5135_s16 }
 0x472   : > { %s5990_s24 = smov %s5124_s7  ;;  %23 = sbr.rel (!%p21_p12) target bundleno = 7 (0x7), region = 105 }
 0x479   :  { %3620 = vsyncpa [#allocation3], 1 }
 0x47a   :  { %3622 = vsyncpa [#allocation3 + $0x1], 1 }
 0x47b   :  { %3623 = vsyncpa [#allocation6], 1 }
 0x47c   :  { %3624 = vsyncpa [#allocation9], 1 }
 0x47d   :  { %3625 = vsyncpa [#allocation4], 1 }
 0x47e   :  { %3627 = vsyncpa [#allocation4 + $0x1], 1 }

</bundles_post_ra>
